<compile_context>
chip_gen: v6e
topology: v6e:2x2x1
jax: 0.10.0
libtpu: 0.0.40
codegen_flags: <defaults>
</compile_context>

<pallas_src>
import functools
import math

import jax
import jax.numpy as jnp
from jax.experimental import pallas as pl
from jax.experimental.pallas import tpu as pltpu


# ----------------------------- Pallas kernel -------------------------------

def _nezha_attn_kernel(hid_ref, wqkv_ref, bqkv_ref, mask_ref, pos_ref,
                       posvt_ref, cosr_ref, sinr_ref, thi_ref, tlo_ref,
                       ctx_ref, scores_ref, *, max_rel, heads_per_step, head_dim):
    """One (batch, head-block) step: fused QKV proj + NeZha relative attention."""
    f32 = jnp.float32
    d = head_dim
    S = hid_ref.shape[0]
    clip_active = max_rel < S - 1          # static: any |j-i| > R in this seq?
    inv_sqrt_d = 1.0 / math.sqrt(d)

    hid = hid_ref[...]                     # (S, E)  caller dtype
    mask = mask_ref[...].astype(f32)       # (1, S)  additive mask
    pos = pos_ref[...].astype(f32)         # (S, d)  sin/cos(j*w), interleaved
    pos_vt = posvt_ref[...].astype(f32)    # (S, 2d) [pos | pair-swapped pos]
    cosr = cosr_ref[...].astype(f32)       # (S, d)  cos((R-i)*w), pair-duplicated
    sinr = sinr_ref[...].astype(f32)       # (S, d)  [-sin,+sin]((R-i)*w)

    if clip_active:                        # static specialization (Python if)
        ii = jax.lax.broadcasted_iota(jnp.int32, (S, S), 0)
        jj = jax.lax.broadcasted_iota(jnp.int32, (S, S), 1)
        dist = jj - ii
        hi = dist > max_rel
        lo = dist < -max_rel
        t_hi = thi_ref[...].astype(f32)    # (1, d)  embedding row v = 2R
        t_lo = tlo_ref[...].astype(f32)    # (1, d)  embedding row v = 0

    dn = (((1,), (1,)), ((), ()))          # contract last dims (i.e. a @ b^T)
    h0 = pl.program_id(1) * heads_per_step

    for hb in range(heads_per_step):       # small static unroll over heads
        h = h0 + hb
        w = wqkv_ref[h]                    # (E, 4d) = [wq | wk | wv | wq_swapped]
        bias = bqkv_ref[h].astype(f32)     # (1, 4d)

        qkv = jnp.dot(hid, w, preferred_element_type=f32) + bias
        q = qkv[:, 0 * d:1 * d]
        k = qkv[:, 1 * d:2 * d]
        v = qkv[:, 2 * d:3 * d]
        q_sw = qkv[:, 3 * d:4 * d]         # q with channels 2m <-> 2m+1 swapped

        # relative-key coefficients: rotate q by the per-row angle (R - i) * w
        coef = q * cosr + q_sw * sinr      # (S, d)

        if clip_active:
            scores = jax.lax.dot_general(q, k, dn, preferred_element_type=f32)
            rel_mid = jax.lax.dot_general(coef, pos, dn, preferred_element_type=f32)
            q_hi = jnp.sum(q * t_hi, axis=-1, keepdims=True)      # clipped bands
            q_lo = jnp.sum(q * t_lo, axis=-1, keepdims=True)
            scores = scores + jnp.where(hi, q_hi, jnp.where(lo, q_lo, rel_mid))
        else:
            # content + relative-key scores in ONE K = 2d contraction
            lhs = jnp.concatenate([q, coef], axis=1)               # (S, 2d)
            rhs = jnp.concatenate([k, pos], axis=1)                # (S, 2d)
            scores = jax.lax.dot_general(lhs, rhs, dn, preferred_element_type=f32)

        scores = scores * inv_sqrt_d + mask        # post-scale, post-mask
        scores_ref[hb] = scores.astype(scores_ref.dtype)

        # ---- softmax over keys (exp on VPU, reciprocal on EUP) ----
        m = jnp.max(scores, axis=-1, keepdims=True)
        e = jnp.exp(scores - m)
        p = e * pl.reciprocal(jnp.sum(e, axis=-1, keepdims=True), approx=True)

        # ---- context: p @ v plus relative-position value term ----
        if clip_active:
            ctx = jnp.dot(p, v, preferred_element_type=f32)        # (S, d)
            p_mid = jnp.where(hi | lo, 0.0, p)
            psc2 = jnp.dot(p_mid, pos_vt, preferred_element_type=f32)   # (S, 2d)
            psc, psc_sw = psc2[:, :d], psc2[:, d:]
            p_hi = jnp.sum(jnp.where(hi, p, 0.0), axis=-1, keepdims=True)
            p_lo = jnp.sum(jnp.where(lo, p, 0.0), axis=-1, keepdims=True)
        else:
            rhs_v = jnp.concatenate([v, pos_vt], axis=1)           # (S, 3d)
            cv = jnp.dot(p, rhs_v, preferred_element_type=f32)     # (S, 3d)
            ctx, psc, psc_sw = cv[:, :d], cv[:, d:2 * d], cv[:, 2 * d:]

        out = ctx + psc * cosr - psc_sw * sinr                     # inverse rotation
        if clip_active:
            out = out + p_hi * t_hi + p_lo * t_lo                  # rank-1 fixup
        ctx_ref[:, hb * d:(hb + 1) * d] = out.astype(ctx_ref.dtype)


# --------------------------- parameter / glue code --------------------------

def _interleave_pairs(a, b):
    """(..., d2), (..., d2) -> (..., d) with out[..., 2m] = a, out[..., 2m+1] = b."""
    stacked = jnp.stack([a, b], axis=-1)
    return stacked.reshape(stacked.shape[:-2] + (2 * a.shape[-1],))


def _make_rel_tables(S, d, R):
    """Small sinusoid tables replacing the (S, S, d) relative-position tensor.

    All tables keep the module's native interleaved channel order
    (even channels = sin, odd channels = cos)."""
    d2 = d // 2
    m = jnp.arange(d2, dtype=jnp.float32)
    w = jnp.power(10000.0, -2.0 * m / d)                            # (d2,)
    ang_j = jnp.arange(S, dtype=jnp.float32)[:, None] * w           # (S, d2)  j*w
    pos = _interleave_pairs(jnp.sin(ang_j), jnp.cos(ang_j))         # (S, d)
    pos_sw = _interleave_pairs(jnp.cos(ang_j), jnp.sin(ang_j))      # pair-swapped
    pos_vt = jnp.concatenate([pos, pos_sw], axis=1)                 # (S, 2d)
    ang_i = (R - jnp.arange(S, dtype=jnp.float32))[:, None] * w     # (S, d2) (R-i)*w
    ci, si = jnp.cos(ang_i), jnp.sin(ang_i)
    cosr = _interleave_pairs(ci, ci)                                # (S, d)
    sinr = _interleave_pairs(-si, si)                               # (S, d)
    # embedding-table rows used when the distance is clipped (v = 2R and v = 0)
    t_hi = _interleave_pairs(jnp.sin(2.0 * R * w), jnp.cos(2.0 * R * w))[None, :]
    t_lo = _interleave_pairs(jnp.zeros_like(w), jnp.ones_like(w))[None, :]
    return pos, pos_vt, cosr, sinr, t_hi, t_lo


def _pick_heads_per_step(H, d):
    """Smallest head count per grid step giving a lane-dense (>=128) ctx block."""
    for hb in range(1, H + 1):
        if H % hb == 0 and (hb * d) % 128 == 0:
            return hb
    return H   # fall back: write the full (S, E) row block in one step


def nezha_self_attention(hidden_states, attention_mask, params, num_heads,
                         max_relative_position=127, vmem_limit_bytes=None):
    """Fused NeZhaSelfAttention.  Returns (context_layer, attention_scores)."""
    B, S, E = hidden_states.shape
    H = num_heads
    d = E // H
    assert E % H == 0 and d % 2 == 0, "head_dim must be even (sin/cos pairs)"
    HB = _pick_heads_per_step(H, d)
    n_hblk = H // HB
    dtype = hidden_states.dtype
    f32 = jnp.float32

    # pack [wq | wk | wv | wq_pair_swapped] per head: (H, E, 4d) and (H, 1, 4d)
    pair = jnp.arange(d) ^ 1                                   # 2m <-> 2m+1

    def split_w(w):                                            # (E, E) -> (H, E, d)
        return jnp.transpose(w.reshape(E, H, d), (1, 0, 2))

    wq, wk, wv = split_w(params["wq"]), split_w(params["wk"]), split_w(params["wv"])
    wqkv = jnp.concatenate([wq, wk, wv, wq[:, :, pair]], axis=-1).astype(dtype)
    bq = params["bq"].reshape(H, 1, d)
    bk = params["bk"].reshape(H, 1, d)
    bv = params["bv"].reshape(H, 1, d)
    bqkv = jnp.concatenate([bq, bk, bv, bq[:, :, pair]], axis=-1).astype(f32)

    pos, pos_vt, cosr, sinr, t_hi, t_lo = _make_rel_tables(S, d, max_relative_position)
    mask = attention_mask.astype(f32).reshape(B, 1, S)   # no (B*H, S, S) broadcast

    kernel = functools.partial(_nezha_attn_kernel,
                               max_rel=max_relative_position,
                               heads_per_step=HB, head_dim=d)

    ctx, scores = pl.pallas_call(
        kernel,
        grid=(B, n_hblk),
        in_specs=[
            pl.BlockSpec((None, S, E), lambda b, h: (b, 0, 0)),     # hidden (reused over h)
            pl.BlockSpec((H, E, 4 * d), lambda b, h: (0, 0, 0)),    # packed W (resident)
            pl.BlockSpec((H, 1, 4 * d), lambda b, h: (0, 0, 0)),    # packed bias (resident)
            pl.BlockSpec((None, 1, S), lambda b, h: (b, 0, 0)),     # additive mask
            pl.BlockSpec((S, d), lambda b, h: (0, 0)),              # pos  = sin/cos(j*w)
            pl.BlockSpec((S, 2 * d), lambda b, h: (0, 0)),          # [pos | pos_swapped]
            pl.BlockSpec((S, d), lambda b, h: (0, 0)),              # cos((R-i)*w)
            pl.BlockSpec((S, d), lambda b, h: (0, 0)),              # [-sin,+sin]((R-i)*w)
            pl.BlockSpec((1, d), lambda b, h: (0, 0)),              # clipped row v = 2R
            pl.BlockSpec((1, d), lambda b, h: (0, 0)),              # clipped row v = 0
        ],
        out_specs=(
            pl.BlockSpec((None, S, HB * d), lambda b, h: (b, 0, h)),   # ctx -> (B, S, E)
            pl.BlockSpec((None, HB, S, S), lambda b, h: (b, h, 0, 0)),  # scores
        ),
        out_shape=(jax.ShapeDtypeStruct((B, S, E), dtype),
                   jax.ShapeDtypeStruct((B, H, S, S), dtype)),
        compiler_params=pltpu.CompilerParams(
            dimension_semantics=("parallel", "parallel"),
            vmem_limit_bytes=vmem_limit_bytes),
    )(hidden_states, wqkv, bqkv, mask, pos, pos_vt, cosr, sinr, t_hi, t_lo)

    return ctx, scores      # ctx: (B, S, E) in original channel order; scores: (B, H, S, S)


# -------------------------- pure-JAX reference check ------------------------

def _relative_positions_embeddings(length, depth, max_relative_position=127):
    """Faithful port of _generate_relative_positions_embeddings (table + gather)."""
    rv = jnp.arange(length)
    dist = rv[None, :] - rv[:, None]
    dist = jnp.clip(dist, -max_relative_position, max_relative_position)
    final = dist + max_relative_position
    vocab = 2 * max_relative_position + 1
    pos = jnp.arange(vocab, dtype=jnp.float32)[:, None]
    i = jnp.arange(depth // 2, dtype=jnp.float32)
    inv = jnp.power(10000.0, 2.0 * i / depth)
    ang = pos / inv[None, :]
    table = jnp.zeros((vocab, depth), dtype=jnp.float32)
    table = table.at[:, 0::2].set(jnp.sin(ang))
    table = table.at[:, 1::2].set(jnp.cos(ang))
    return table[final]                                          # (L, L, depth)


def _reference(hidden_states, attention_mask, params, num_heads, max_rel=127):
    B, S, E = hidden_states.shape
    d = E // num_heads
    q = hidden_states @ params["wq"] + params["bq"]
    k = hidden_states @ params["wk"] + params["bk"]
    v = hidden_states @ params["wv"] + params["bv"]
    tr = lambda x: x.reshape(B, S, num_heads, d).transpose(0, 2, 1, 3)
    q, k, v = tr(q), tr(k), tr(v)
    rel = _relative_positions_embeddings(S, d, max_rel)
    scores = jnp.einsum("bhid,bhjd->bhij", q, k)
    scores = scores + jnp.einsum("bhid,ijd->bhij", q, rel)
    scores = scores / math.sqrt(d) + attention_mask
    probs = jax.nn.softmax(scores, axis=-1)
    ctx = jnp.einsum("bhij,bhjd->bhid", probs, v)
    ctx = ctx + jnp.einsum("bhij,ijd->bhid", probs, rel)
    ctx = ctx.transpose(0, 2, 1, 3).reshape(B, S, E)
    return ctx, scores


# ----------------------------------- main -----------------------------------

if __name__ == "__main__":
    B, S, E, H = 2, 8, 32, 4     # batch, seq, hidden, heads  (head_dim = 8)
    key = jax.random.PRNGKey(0)
    k_h, k_wq, k_wk, k_wv, k_bq, k_bk, k_bv = jax.random.split(key, 7)

    hidden_states = jax.random.normal(k_h, (B, S, E), dtype=jnp.float32)
    # additive attention mask (B, 1, 1, S): mask out the last 2 keys of batch 1
    pad = jnp.array([[0] * S, [0] * (S - 2) + [1, 1]], dtype=jnp.float32)
    attention_mask = (pad * -10000.0).reshape(B, 1, 1, S)

    params = {
        "wq": 0.02 * jax.random.normal(k_wq, (E, E), dtype=jnp.float32),
        "wk": 0.02 * jax.random.normal(k_wk, (E, E), dtype=jnp.float32),
        "wv": 0.02 * jax.random.normal(k_wv, (E, E), dtype=jnp.float32),
        "bq": 0.02 * jax.random.normal(k_bq, (E,), dtype=jnp.float32),
        "bk": 0.02 * jax.random.normal(k_bk, (E,), dtype=jnp.float32),
        "bv": 0.02 * jax.random.normal(k_bv, (E,), dtype=jnp.float32),
    }

    # R=127: no distance clipping (specialized fused path);
    # R=4 (< S-1): exercises the clipped-band fixup path.
    for R in (127, 4):
        ctx, scores = nezha_self_attention(hidden_states, attention_mask, params,
                                           num_heads=H, max_relative_position=R)
        jax.block_until_ready((ctx, scores))
        ref_ctx, ref_scores = _reference(hidden_states, attention_mask, params, H, R)
        assert ctx.shape == (B, S, E) and scores.shape == (B, H, S, S)
        assert jnp.allclose(scores, ref_scores, atol=2e-3, rtol=2e-3), f"scores mismatch R={R}"
        assert jnp.allclose(ctx, ref_ctx, atol=2e-3, rtol=2e-3), f"ctx mismatch R={R}"

    print("KERNEL_OK")
</pallas_src>

<mosaic_0001>
module attributes {stable_mosaic.version = 11 : i64} {
  func.func @_nezha_attn_kernel(%arg0: i32, %arg1: i32, %arg2: memref<1x8x32xf32, #tpu.memory_space<vmem>>, %arg3: memref<4x32x32xf32, #tpu.memory_space<vmem>>, %arg4: memref<4x1x32xf32, #tpu.memory_space<vmem>>, %arg5: memref<1x1x8xf32, #tpu.memory_space<vmem>>, %arg6: memref<8x8xf32, #tpu.memory_space<vmem>>, %arg7: memref<8x16xf32, #tpu.memory_space<vmem>>, %arg8: memref<8x8xf32, #tpu.memory_space<vmem>>, %arg9: memref<8x8xf32, #tpu.memory_space<vmem>>, %arg10: memref<1x8xf32, #tpu.memory_space<vmem>>, %arg11: memref<1x8xf32, #tpu.memory_space<vmem>>, %arg12: memref<1x8x32xf32, #tpu.memory_space<vmem>>, %arg13: memref<1x4x8x8xf32, #tpu.memory_space<vmem>>) attributes {dimension_semantics = [#tpu.dimension_semantics<parallel>, #tpu.dimension_semantics<parallel>], iteration_bounds = array<i64: 2, 1>, scalar_prefetch = 0 : i64, scratch_operands = 0 : i64, tpu.core_type = #tpu.core_type<tc>, window_params = [{transform_indices = @transform_0, window_bounds = array<i64: 1, 8, 32>}, {pipeline_mode = #tpu.pipeline_mode<synchronous>, transform_indices = @transform_1, window_bounds = array<i64: 4, 32, 32>}, {pipeline_mode = #tpu.pipeline_mode<synchronous>, transform_indices = @transform_2, window_bounds = array<i64: 4, 1, 32>}, {transform_indices = @transform_3, window_bounds = array<i64: 1, 1, 8>}, {pipeline_mode = #tpu.pipeline_mode<synchronous>, transform_indices = @transform_4, window_bounds = array<i64: 8, 8>}, {pipeline_mode = #tpu.pipeline_mode<synchronous>, transform_indices = @transform_5, window_bounds = array<i64: 8, 16>}, {pipeline_mode = #tpu.pipeline_mode<synchronous>, transform_indices = @transform_6, window_bounds = array<i64: 8, 8>}, {pipeline_mode = #tpu.pipeline_mode<synchronous>, transform_indices = @transform_7, window_bounds = array<i64: 8, 8>}, {pipeline_mode = #tpu.pipeline_mode<synchronous>, transform_indices = @transform_8, window_bounds = array<i64: 1, 8>}, {pipeline_mode = #tpu.pipeline_mode<synchronous>, transform_indices = @transform_9, window_bounds = array<i64: 1, 8>}, {transform_indices = @transform_10, window_bounds = array<i64: 1, 8, 32>}, {transform_indices = @transform_11, window_bounds = array<i64: 1, 4, 8, 8>}]} {
    %c0 = arith.constant 0 : index
    %c0_0 = arith.constant 0 : index
    %c0_1 = arith.constant 0 : index
    %0 = vector.load %arg2[%c0, %c0_0, %c0_1] : memref<1x8x32xf32, #tpu.memory_space<vmem>>, vector<1x8x32xf32>
    %1 = vector.shape_cast %0 : vector<1x8x32xf32> to vector<8x32xf32>
    %c0_2 = arith.constant 0 : index
    %c0_3 = arith.constant 0 : index
    %c0_4 = arith.constant 0 : index
    %2 = vector.load %arg5[%c0_2, %c0_3, %c0_4] : memref<1x1x8xf32, #tpu.memory_space<vmem>>, vector<1x1x8xf32>
    %3 = vector.shape_cast %2 : vector<1x1x8xf32> to vector<1x8xf32>
    %c0_5 = arith.constant 0 : index
    %c0_6 = arith.constant 0 : index
    %4 = vector.load %arg6[%c0_5, %c0_6] : memref<8x8xf32, #tpu.memory_space<vmem>>, vector<8x8xf32>
    %c0_7 = arith.constant 0 : index
    %c0_8 = arith.constant 0 : index
    %5 = vector.load %arg7[%c0_7, %c0_8] : memref<8x16xf32, #tpu.memory_space<vmem>>, vector<8x16xf32>
    %c0_9 = arith.constant 0 : index
    %c0_10 = arith.constant 0 : index
    %6 = vector.load %arg8[%c0_9, %c0_10] : memref<8x8xf32, #tpu.memory_space<vmem>>, vector<8x8xf32>
    %c0_11 = arith.constant 0 : index
    %c0_12 = arith.constant 0 : index
    %7 = vector.load %arg9[%c0_11, %c0_12] : memref<8x8xf32, #tpu.memory_space<vmem>>, vector<8x8xf32>
    %c4_i32 = arith.constant 4 : i32
    %8 = arith.muli %arg1, %c4_i32 : i32
    %c0_i32 = arith.constant 0 : i32
    %9 = arith.addi %8, %c0_i32 : i32
    %10 = arith.index_cast %9 : i32 to index
    %c0_13 = arith.constant 0 : index
    %c0_14 = arith.constant 0 : index
    %11 = vector.load %arg3[%10, %c0_13, %c0_14] : memref<4x32x32xf32, #tpu.memory_space<vmem>>, vector<1x32x32xf32>
    %12 = vector.shape_cast %11 : vector<1x32x32xf32> to vector<32x32xf32>
    %13 = arith.index_cast %9 : i32 to index
    %c0_15 = arith.constant 0 : index
    %c0_16 = arith.constant 0 : index
    %14 = vector.load %arg4[%13, %c0_15, %c0_16] : memref<4x1x32xf32, #tpu.memory_space<vmem>>, vector<1x1x32xf32>
    %15 = vector.shape_cast %14 : vector<1x1x32xf32> to vector<1x32xf32>
    %cst = arith.constant dense<0.000000e+00> : vector<8x32xf32>
    %16 = tpu.matmul %1, %12, %cst {dimension_numbers = #tpu.dot_dimension_numbers<[1], [0], [0], [1], [0, 0, 1, 1], [], []>} : vector<8x32xf32>, vector<32x32xf32>, vector<8x32xf32> -> vector<8x32xf32>
    %17 = vector.broadcast %15 : vector<1x32xf32> to vector<8x32xf32>
    %18 = arith.addf %16, %17 : vector<8x32xf32>
    %19 = vector.extract_strided_slice %18 {offsets = [0, 0], sizes = [8, 8], strides = [1, 1]} : vector<8x32xf32> to vector<8x8xf32>
    %20 = vector.extract_strided_slice %18 {offsets = [0, 8], sizes = [8, 8], strides = [1, 1]} : vector<8x32xf32> to vector<8x8xf32>
    %21 = vector.extract_strided_slice %18 {offsets = [0, 16], sizes = [8, 8], strides = [1, 1]} : vector<8x32xf32> to vector<8x8xf32>
    %22 = vector.extract_strided_slice %18 {offsets = [0, 24], sizes = [8, 8], strides = [1, 1]} : vector<8x32xf32> to vector<8x8xf32>
    %23 = arith.mulf %19, %6 : vector<8x8xf32>
    %24 = arith.mulf %22, %7 : vector<8x8xf32>
    %25 = arith.addf %23, %24 : vector<8x8xf32>
    %26 = tpu.concatenate %19, %25 in 1 : vector<8x8xf32>, vector<8x8xf32> -> vector<8x16xf32>
    %27 = tpu.concatenate %20, %4 in 1 : vector<8x8xf32>, vector<8x8xf32> -> vector<8x16xf32>
    %cst_17 = arith.constant dense<0.000000e+00> : vector<8x8xf32>
    %28 = tpu.matmul %26, %27, %cst_17 {dimension_numbers = #tpu.dot_dimension_numbers<[1], [1], [0], [0], [0, 0, 1, 0], [], []>} : vector<8x16xf32>, vector<8x16xf32>, vector<8x8xf32> -> vector<8x8xf32>
    %cst_18 = arith.constant 0.353553385 : f32
    %29 = vector.broadcast %cst_18 : f32 to vector<8x8xf32>
    %30 = arith.mulf %28, %29 : vector<8x8xf32>
    %31 = vector.broadcast %3 : vector<1x8xf32> to vector<8x8xf32>
    %32 = arith.addf %30, %31 : vector<8x8xf32>
    %c0_19 = arith.constant 0 : index
    %c0_20 = arith.constant 0 : index
    %c0_21 = arith.constant 0 : index
    %c0_22 = arith.constant 0 : index
    %33 = vector.load %arg13[%c0_19, %c0_20, %c0_21, %c0_22] : memref<1x4x8x8xf32, #tpu.memory_space<vmem>>, vector<1x1x8x8xf32>
    %34 = vector.shape_cast %33 : vector<1x1x8x8xf32> to vector<8x8xf32>
    %35 = vector.shape_cast %32 : vector<8x8xf32> to vector<1x1x8x8xf32>
    tpu.vector_store %arg13[%c0_19, %c0_20, %c0_21, %c0_22], %35 {strides = array<i32>} : memref<1x4x8x8xf32, #tpu.memory_space<vmem>>, vector<1x1x8x8xf32>,
    %cst_23 = arith.constant dense<0xFF800000> : vector<8xf32>
    %36 = vector.multi_reduction <maximumf>, %32, %cst_23 [1] : vector<8x8xf32> to vector<8xf32>
    %37 = vector.shape_cast %36 : vector<8xf32> to vector<8x1xf32>
    %38 = vector.broadcast %37 : vector<8x1xf32> to vector<8x8xf32>
    %39 = arith.subf %32, %38 : vector<8x8xf32>
    %40 = math.exp %39 : vector<8x8xf32>
    %cst_24 = arith.constant dense<0.000000e+00> : vector<8xf32>
    %41 = vector.multi_reduction <add>, %40, %cst_24 [1] : vector<8x8xf32> to vector<8xf32>
    %42 = vector.shape_cast %41 : vector<8xf32> to vector<8x1xf32>
    %43 = tpu.reciprocal %42 {approx = true} : vector<8x1xf32> -> vector<8x1xf32>
    %44 = vector.broadcast %43 : vector<8x1xf32> to vector<8x8xf32>
    %45 = arith.mulf %40, %44 : vector<8x8xf32>
    %46 = tpu.concatenate %21, %5 in 1 : vector<8x8xf32>, vector<8x16xf32> -> vector<8x24xf32>
    %cst_25 = arith.constant dense<0.000000e+00> : vector<8x24xf32>
    %47 = tpu.matmul %45, %46, %cst_25 {dimension_numbers = #tpu.dot_dimension_numbers<[1], [0], [0], [1], [0, 0, 1, 1], [], []>} : vector<8x8xf32>, vector<8x24xf32>, vector<8x24xf32> -> vector<8x24xf32>
    %48 = vector.extract_strided_slice %47 {offsets = [0, 0], sizes = [8, 8], strides = [1, 1]} : vector<8x24xf32> to vector<8x8xf32>
    %49 = vector.extract_strided_slice %47 {offsets = [0, 8], sizes = [8, 8], strides = [1, 1]} : vector<8x24xf32> to vector<8x8xf32>
    %50 = vector.extract_strided_slice %47 {offsets = [0, 16], sizes = [8, 8], strides = [1, 1]} : vector<8x24xf32> to vector<8x8xf32>
    %51 = arith.mulf %49, %6 : vector<8x8xf32>
    %52 = arith.addf %48, %51 : vector<8x8xf32>
    %53 = arith.mulf %50, %7 : vector<8x8xf32>
    %54 = arith.subf %52, %53 : vector<8x8xf32>
    %c0_26 = arith.constant 0 : index
    %c0_27 = arith.constant 0 : index
    %c0_28 = arith.constant 0 : index
    %55 = vector.load %arg12[%c0_26, %c0_27, %c0_28] : memref<1x8x32xf32, #tpu.memory_space<vmem>>, vector<1x8x8xf32>
    %56 = vector.shape_cast %55 : vector<1x8x8xf32> to vector<8x8xf32>
    %57 = vector.shape_cast %54 : vector<8x8xf32> to vector<1x8x8xf32>
    tpu.vector_store %arg12[%c0_26, %c0_27, %c0_28], %57 {strides = array<i32>} : memref<1x8x32xf32, #tpu.memory_space<vmem>>, vector<1x8x8xf32>,
    %c1_i32 = arith.constant 1 : i32
    %58 = arith.addi %8, %c1_i32 : i32
    %59 = arith.index_cast %58 : i32 to index
    %c0_29 = arith.constant 0 : index
    %c0_30 = arith.constant 0 : index
    %60 = vector.load %arg3[%59, %c0_29, %c0_30] : memref<4x32x32xf32, #tpu.memory_space<vmem>>, vector<1x32x32xf32>
    %61 = vector.shape_cast %60 : vector<1x32x32xf32> to vector<32x32xf32>
    %62 = arith.index_cast %58 : i32 to index
    %c0_31 = arith.constant 0 : index
    %c0_32 = arith.constant 0 : index
    %63 = vector.load %arg4[%62, %c0_31, %c0_32] : memref<4x1x32xf32, #tpu.memory_space<vmem>>, vector<1x1x32xf32>
    %64 = vector.shape_cast %63 : vector<1x1x32xf32> to vector<1x32xf32>
    %cst_33 = arith.constant dense<0.000000e+00> : vector<8x32xf32>
    %65 = tpu.matmul %1, %61, %cst_33 {dimension_numbers = #tpu.dot_dimension_numbers<[1], [0], [0], [1], [0, 0, 1, 1], [], []>} : vector<8x32xf32>, vector<32x32xf32>, vector<8x32xf32> -> vector<8x32xf32>
    %66 = vector.broadcast %64 : vector<1x32xf32> to vector<8x32xf32>
    %67 = arith.addf %65, %66 : vector<8x32xf32>
    %68 = vector.extract_strided_slice %67 {offsets = [0, 0], sizes = [8, 8], strides = [1, 1]} : vector<8x32xf32> to vector<8x8xf32>
    %69 = vector.extract_strided_slice %67 {offsets = [0, 8], sizes = [8, 8], strides = [1, 1]} : vector<8x32xf32> to vector<8x8xf32>
    %70 = vector.extract_strided_slice %67 {offsets = [0, 16], sizes = [8, 8], strides = [1, 1]} : vector<8x32xf32> to vector<8x8xf32>
    %71 = vector.extract_strided_slice %67 {offsets = [0, 24], sizes = [8, 8], strides = [1, 1]} : vector<8x32xf32> to vector<8x8xf32>
    %72 = arith.mulf %68, %6 : vector<8x8xf32>
    %73 = arith.mulf %71, %7 : vector<8x8xf32>
    %74 = arith.addf %72, %73 : vector<8x8xf32>
    %75 = tpu.concatenate %68, %74 in 1 : vector<8x8xf32>, vector<8x8xf32> -> vector<8x16xf32>
    %76 = tpu.concatenate %69, %4 in 1 : vector<8x8xf32>, vector<8x8xf32> -> vector<8x16xf32>
    %cst_34 = arith.constant dense<0.000000e+00> : vector<8x8xf32>
    %77 = tpu.matmul %75, %76, %cst_34 {dimension_numbers = #tpu.dot_dimension_numbers<[1], [1], [0], [0], [0, 0, 1, 0], [], []>} : vector<8x16xf32>, vector<8x16xf32>, vector<8x8xf32> -> vector<8x8xf32>
    %cst_35 = arith.constant 0.353553385 : f32
    %78 = vector.broadcast %cst_35 : f32 to vector<8x8xf32>
    %79 = arith.mulf %77, %78 : vector<8x8xf32>
    %80 = vector.broadcast %3 : vector<1x8xf32> to vector<8x8xf32>
    %81 = arith.addf %79, %80 : vector<8x8xf32>
    %c0_36 = arith.constant 0 : index
    %c1 = arith.constant 1 : index
    %c0_37 = arith.constant 0 : index
    %c0_38 = arith.constant 0 : index
    %82 = vector.load %arg13[%c0_36, %c1, %c0_37, %c0_38] : memref<1x4x8x8xf32, #tpu.memory_space<vmem>>, vector<1x1x8x8xf32>
    %83 = vector.shape_cast %82 : vector<1x1x8x8xf32> to vector<8x8xf32>
    %84 = vector.shape_cast %81 : vector<8x8xf32> to vector<1x1x8x8xf32>
    tpu.vector_store %arg13[%c0_36, %c1, %c0_37, %c0_38], %84 {strides = array<i32>} : memref<1x4x8x8xf32, #tpu.memory_space<vmem>>, vector<1x1x8x8xf32>,
    %cst_39 = arith.constant dense<0xFF800000> : vector<8xf32>
    %85 = vector.multi_reduction <maximumf>, %81, %cst_39 [1] : vector<8x8xf32> to vector<8xf32>
    %86 = vector.shape_cast %85 : vector<8xf32> to vector<8x1xf32>
    %87 = vector.broadcast %86 : vector<8x1xf32> to vector<8x8xf32>
    %88 = arith.subf %81, %87 : vector<8x8xf32>
    %89 = math.exp %88 : vector<8x8xf32>
    %cst_40 = arith.constant dense<0.000000e+00> : vector<8xf32>
    %90 = vector.multi_reduction <add>, %89, %cst_40 [1] : vector<8x8xf32> to vector<8xf32>
    %91 = vector.shape_cast %90 : vector<8xf32> to vector<8x1xf32>
    %92 = tpu.reciprocal %91 {approx = true} : vector<8x1xf32> -> vector<8x1xf32>
    %93 = vector.broadcast %92 : vector<8x1xf32> to vector<8x8xf32>
    %94 = arith.mulf %89, %93 : vector<8x8xf32>
    %95 = tpu.concatenate %70, %5 in 1 : vector<8x8xf32>, vector<8x16xf32> -> vector<8x24xf32>
    %cst_41 = arith.constant dense<0.000000e+00> : vector<8x24xf32>
    %96 = tpu.matmul %94, %95, %cst_41 {dimension_numbers = #tpu.dot_dimension_numbers<[1], [0], [0], [1], [0, 0, 1, 1], [], []>} : vector<8x8xf32>, vector<8x24xf32>, vector<8x24xf32> -> vector<8x24xf32>
    %97 = vector.extract_strided_slice %96 {offsets = [0, 0], sizes = [8, 8], strides = [1, 1]} : vector<8x24xf32> to vector<8x8xf32>
    %98 = vector.extract_strided_slice %96 {offsets = [0, 8], sizes = [8, 8], strides = [1, 1]} : vector<8x24xf32> to vector<8x8xf32>
    %99 = vector.extract_strided_slice %96 {offsets = [0, 16], sizes = [8, 8], strides = [1, 1]} : vector<8x24xf32> to vector<8x8xf32>
    %100 = arith.mulf %98, %6 : vector<8x8xf32>
    %101 = arith.addf %97, %100 : vector<8x8xf32>
    %102 = arith.mulf %99, %7 : vector<8x8xf32>
    %103 = arith.subf %101, %102 : vector<8x8xf32>
    %c0_42 = arith.constant 0 : index
    %c0_43 = arith.constant 0 : index
    %c8 = arith.constant 8 : index
    %104 = vector.load %arg12[%c0_42, %c0_43, %c8] : memref<1x8x32xf32, #tpu.memory_space<vmem>>, vector<1x8x8xf32>
    %105 = vector.shape_cast %104 : vector<1x8x8xf32> to vector<8x8xf32>
    %106 = vector.shape_cast %103 : vector<8x8xf32> to vector<1x8x8xf32>
    tpu.vector_store %arg12[%c0_42, %c0_43, %c8], %106 {strides = array<i32>} : memref<1x8x32xf32, #tpu.memory_space<vmem>>, vector<1x8x8xf32>,
    %c2_i32 = arith.constant 2 : i32
    %107 = arith.addi %8, %c2_i32 : i32
    %108 = arith.index_cast %107 : i32 to index
    %c0_44 = arith.constant 0 : index
    %c0_45 = arith.constant 0 : index
    %109 = vector.load %arg3[%108, %c0_44, %c0_45] : memref<4x32x32xf32, #tpu.memory_space<vmem>>, vector<1x32x32xf32>
    %110 = vector.shape_cast %109 : vector<1x32x32xf32> to vector<32x32xf32>
    %111 = arith.index_cast %107 : i32 to index
    %c0_46 = arith.constant 0 : index
    %c0_47 = arith.constant 0 : index
    %112 = vector.load %arg4[%111, %c0_46, %c0_47] : memref<4x1x32xf32, #tpu.memory_space<vmem>>, vector<1x1x32xf32>
    %113 = vector.shape_cast %112 : vector<1x1x32xf32> to vector<1x32xf32>
    %cst_48 = arith.constant dense<0.000000e+00> : vector<8x32xf32>
    %114 = tpu.matmul %1, %110, %cst_48 {dimension_numbers = #tpu.dot_dimension_numbers<[1], [0], [0], [1], [0, 0, 1, 1], [], []>} : vector<8x32xf32>, vector<32x32xf32>, vector<8x32xf32> -> vector<8x32xf32>
    %115 = vector.broadcast %113 : vector<1x32xf32> to vector<8x32xf32>
    %116 = arith.addf %114, %115 : vector<8x32xf32>
    %117 = vector.extract_strided_slice %116 {offsets = [0, 0], sizes = [8, 8], strides = [1, 1]} : vector<8x32xf32> to vector<8x8xf32>
    %118 = vector.extract_strided_slice %116 {offsets = [0, 8], sizes = [8, 8], strides = [1, 1]} : vector<8x32xf32> to vector<8x8xf32>
    %119 = vector.extract_strided_slice %116 {offsets = [0, 16], sizes = [8, 8], strides = [1, 1]} : vector<8x32xf32> to vector<8x8xf32>
    %120 = vector.extract_strided_slice %116 {offsets = [0, 24], sizes = [8, 8], strides = [1, 1]} : vector<8x32xf32> to vector<8x8xf32>
    %121 = arith.mulf %117, %6 : vector<8x8xf32>
    %122 = arith.mulf %120, %7 : vector<8x8xf32>
    %123 = arith.addf %121, %122 : vector<8x8xf32>
    %124 = tpu.concatenate %117, %123 in 1 : vector<8x8xf32>, vector<8x8xf32> -> vector<8x16xf32>
    %125 = tpu.concatenate %118, %4 in 1 : vector<8x8xf32>, vector<8x8xf32> -> vector<8x16xf32>
    %cst_49 = arith.constant dense<0.000000e+00> : vector<8x8xf32>
    %126 = tpu.matmul %124, %125, %cst_49 {dimension_numbers = #tpu.dot_dimension_numbers<[1], [1], [0], [0], [0, 0, 1, 0], [], []>} : vector<8x16xf32>, vector<8x16xf32>, vector<8x8xf32> -> vector<8x8xf32>
    %cst_50 = arith.constant 0.353553385 : f32
    %127 = vector.broadcast %cst_50 : f32 to vector<8x8xf32>
    %128 = arith.mulf %126, %127 : vector<8x8xf32>
    %129 = vector.broadcast %3 : vector<1x8xf32> to vector<8x8xf32>
    %130 = arith.addf %128, %129 : vector<8x8xf32>
    %c0_51 = arith.constant 0 : index
    %c2 = arith.constant 2 : index
    %c0_52 = arith.constant 0 : index
    %c0_53 = arith.constant 0 : index
    %131 = vector.load %arg13[%c0_51, %c2, %c0_52, %c0_53] : memref<1x4x8x8xf32, #tpu.memory_space<vmem>>, vector<1x1x8x8xf32>
    %132 = vector.shape_cast %131 : vector<1x1x8x8xf32> to vector<8x8xf32>
    %133 = vector.shape_cast %130 : vector<8x8xf32> to vector<1x1x8x8xf32>
    tpu.vector_store %arg13[%c0_51, %c2, %c0_52, %c0_53], %133 {strides = array<i32>} : memref<1x4x8x8xf32, #tpu.memory_space<vmem>>, vector<1x1x8x8xf32>,
    %cst_54 = arith.constant dense<0xFF800000> : vector<8xf32>
    %134 = vector.multi_reduction <maximumf>, %130, %cst_54 [1] : vector<8x8xf32> to vector<8xf32>
    %135 = vector.shape_cast %134 : vector<8xf32> to vector<8x1xf32>
    %136 = vector.broadcast %135 : vector<8x1xf32> to vector<8x8xf32>
    %137 = arith.subf %130, %136 : vector<8x8xf32>
    %138 = math.exp %137 : vector<8x8xf32>
    %cst_55 = arith.constant dense<0.000000e+00> : vector<8xf32>
    %139 = vector.multi_reduction <add>, %138, %cst_55 [1] : vector<8x8xf32> to vector<8xf32>
    %140 = vector.shape_cast %139 : vector<8xf32> to vector<8x1xf32>
    %141 = tpu.reciprocal %140 {approx = true} : vector<8x1xf32> -> vector<8x1xf32>
    %142 = vector.broadcast %141 : vector<8x1xf32> to vector<8x8xf32>
    %143 = arith.mulf %138, %142 : vector<8x8xf32>
    %144 = tpu.concatenate %119, %5 in 1 : vector<8x8xf32>, vector<8x16xf32> -> vector<8x24xf32>
    %cst_56 = arith.constant dense<0.000000e+00> : vector<8x24xf32>
    %145 = tpu.matmul %143, %144, %cst_56 {dimension_numbers = #tpu.dot_dimension_numbers<[1], [0], [0], [1], [0, 0, 1, 1], [], []>} : vector<8x8xf32>, vector<8x24xf32>, vector<8x24xf32> -> vector<8x24xf32>
    %146 = vector.extract_strided_slice %145 {offsets = [0, 0], sizes = [8, 8], strides = [1, 1]} : vector<8x24xf32> to vector<8x8xf32>
    %147 = vector.extract_strided_slice %145 {offsets = [0, 8], sizes = [8, 8], strides = [1, 1]} : vector<8x24xf32> to vector<8x8xf32>
    %148 = vector.extract_strided_slice %145 {offsets = [0, 16], sizes = [8, 8], strides = [1, 1]} : vector<8x24xf32> to vector<8x8xf32>
    %149 = arith.mulf %147, %6 : vector<8x8xf32>
    %150 = arith.addf %146, %149 : vector<8x8xf32>
    %151 = arith.mulf %148, %7 : vector<8x8xf32>
    %152 = arith.subf %150, %151 : vector<8x8xf32>
    %c0_57 = arith.constant 0 : index
    %c0_58 = arith.constant 0 : index
    %c16 = arith.constant 16 : index
    %153 = vector.load %arg12[%c0_57, %c0_58, %c16] : memref<1x8x32xf32, #tpu.memory_space<vmem>>, vector<1x8x8xf32>
    %154 = vector.shape_cast %153 : vector<1x8x8xf32> to vector<8x8xf32>
    %155 = vector.shape_cast %152 : vector<8x8xf32> to vector<1x8x8xf32>
    tpu.vector_store %arg12[%c0_57, %c0_58, %c16], %155 {strides = array<i32>} : memref<1x8x32xf32, #tpu.memory_space<vmem>>, vector<1x8x8xf32>,
    %c3_i32 = arith.constant 3 : i32
    %156 = arith.addi %8, %c3_i32 : i32
    %157 = arith.index_cast %156 : i32 to index
    %c0_59 = arith.constant 0 : index
    %c0_60 = arith.constant 0 : index
    %158 = vector.load %arg3[%157, %c0_59, %c0_60] : memref<4x32x32xf32, #tpu.memory_space<vmem>>, vector<1x32x32xf32>
    %159 = vector.shape_cast %158 : vector<1x32x32xf32> to vector<32x32xf32>
    %160 = arith.index_cast %156 : i32 to index
    %c0_61 = arith.constant 0 : index
    %c0_62 = arith.constant 0 : index
    %161 = vector.load %arg4[%160, %c0_61, %c0_62] : memref<4x1x32xf32, #tpu.memory_space<vmem>>, vector<1x1x32xf32>
    %162 = vector.shape_cast %161 : vector<1x1x32xf32> to vector<1x32xf32>
    %cst_63 = arith.constant dense<0.000000e+00> : vector<8x32xf32>
    %163 = tpu.matmul %1, %159, %cst_63 {dimension_numbers = #tpu.dot_dimension_numbers<[1], [0], [0], [1], [0, 0, 1, 1], [], []>} : vector<8x32xf32>, vector<32x32xf32>, vector<8x32xf32> -> vector<8x32xf32>
    %164 = vector.broadcast %162 : vector<1x32xf32> to vector<8x32xf32>
    %165 = arith.addf %163, %164 : vector<8x32xf32>
    %166 = vector.extract_strided_slice %165 {offsets = [0, 0], sizes = [8, 8], strides = [1, 1]} : vector<8x32xf32> to vector<8x8xf32>
    %167 = vector.extract_strided_slice %165 {offsets = [0, 8], sizes = [8, 8], strides = [1, 1]} : vector<8x32xf32> to vector<8x8xf32>
    %168 = vector.extract_strided_slice %165 {offsets = [0, 16], sizes = [8, 8], strides = [1, 1]} : vector<8x32xf32> to vector<8x8xf32>
    %169 = vector.extract_strided_slice %165 {offsets = [0, 24], sizes = [8, 8], strides = [1, 1]} : vector<8x32xf32> to vector<8x8xf32>
    %170 = arith.mulf %166, %6 : vector<8x8xf32>
    %171 = arith.mulf %169, %7 : vector<8x8xf32>
    %172 = arith.addf %170, %171 : vector<8x8xf32>
    %173 = tpu.concatenate %166, %172 in 1 : vector<8x8xf32>, vector<8x8xf32> -> vector<8x16xf32>
    %174 = tpu.concatenate %167, %4 in 1 : vector<8x8xf32>, vector<8x8xf32> -> vector<8x16xf32>
    %cst_64 = arith.constant dense<0.000000e+00> : vector<8x8xf32>
    %175 = tpu.matmul %173, %174, %cst_64 {dimension_numbers = #tpu.dot_dimension_numbers<[1], [1], [0], [0], [0, 0, 1, 0], [], []>} : vector<8x16xf32>, vector<8x16xf32>, vector<8x8xf32> -> vector<8x8xf32>
    %cst_65 = arith.constant 0.353553385 : f32
    %176 = vector.broadcast %cst_65 : f32 to vector<8x8xf32>
    %177 = arith.mulf %175, %176 : vector<8x8xf32>
    %178 = vector.broadcast %3 : vector<1x8xf32> to vector<8x8xf32>
    %179 = arith.addf %177, %178 : vector<8x8xf32>
    %c0_66 = arith.constant 0 : index
    %c3 = arith.constant 3 : index
    %c0_67 = arith.constant 0 : index
    %c0_68 = arith.constant 0 : index
    %180 = vector.load %arg13[%c0_66, %c3, %c0_67, %c0_68] : memref<1x4x8x8xf32, #tpu.memory_space<vmem>>, vector<1x1x8x8xf32>
    %181 = vector.shape_cast %180 : vector<1x1x8x8xf32> to vector<8x8xf32>
    %182 = vector.shape_cast %179 : vector<8x8xf32> to vector<1x1x8x8xf32>
    tpu.vector_store %arg13[%c0_66, %c3, %c0_67, %c0_68], %182 {strides = array<i32>} : memref<1x4x8x8xf32, #tpu.memory_space<vmem>>, vector<1x1x8x8xf32>,
    %cst_69 = arith.constant dense<0xFF800000> : vector<8xf32>
    %183 = vector.multi_reduction <maximumf>, %179, %cst_69 [1] : vector<8x8xf32> to vector<8xf32>
    %184 = vector.shape_cast %183 : vector<8xf32> to vector<8x1xf32>
    %185 = vector.broadcast %184 : vector<8x1xf32> to vector<8x8xf32>
    %186 = arith.subf %179, %185 : vector<8x8xf32>
    %187 = math.exp %186 : vector<8x8xf32>
    %cst_70 = arith.constant dense<0.000000e+00> : vector<8xf32>
    %188 = vector.multi_reduction <add>, %187, %cst_70 [1] : vector<8x8xf32> to vector<8xf32>
    %189 = vector.shape_cast %188 : vector<8xf32> to vector<8x1xf32>
    %190 = tpu.reciprocal %189 {approx = true} : vector<8x1xf32> -> vector<8x1xf32>
    %191 = vector.broadcast %190 : vector<8x1xf32> to vector<8x8xf32>
    %192 = arith.mulf %187, %191 : vector<8x8xf32>
    %193 = tpu.concatenate %168, %5 in 1 : vector<8x8xf32>, vector<8x16xf32> -> vector<8x24xf32>
    %cst_71 = arith.constant dense<0.000000e+00> : vector<8x24xf32>
    %194 = tpu.matmul %192, %193, %cst_71 {dimension_numbers = #tpu.dot_dimension_numbers<[1], [0], [0], [1], [0, 0, 1, 1], [], []>} : vector<8x8xf32>, vector<8x24xf32>, vector<8x24xf32> -> vector<8x24xf32>
    %195 = vector.extract_strided_slice %194 {offsets = [0, 0], sizes = [8, 8], strides = [1, 1]} : vector<8x24xf32> to vector<8x8xf32>
    %196 = vector.extract_strided_slice %194 {offsets = [0, 8], sizes = [8, 8], strides = [1, 1]} : vector<8x24xf32> to vector<8x8xf32>
    %197 = vector.extract_strided_slice %194 {offsets = [0, 16], sizes = [8, 8], strides = [1, 1]} : vector<8x24xf32> to vector<8x8xf32>
    %198 = arith.mulf %196, %6 : vector<8x8xf32>
    %199 = arith.addf %195, %198 : vector<8x8xf32>
    %200 = arith.mulf %197, %7 : vector<8x8xf32>
    %201 = arith.subf %199, %200 : vector<8x8xf32>
    %c0_72 = arith.constant 0 : index
    %c0_73 = arith.constant 0 : index
    %c24 = arith.constant 24 : index
    %202 = vector.load %arg12[%c0_72, %c0_73, %c24] : memref<1x8x32xf32, #tpu.memory_space<vmem>>, vector<1x8x8xf32>
    %203 = vector.shape_cast %202 : vector<1x8x8xf32> to vector<8x8xf32>
    %204 = vector.shape_cast %201 : vector<8x8xf32> to vector<1x8x8xf32>
    tpu.vector_store %arg12[%c0_72, %c0_73, %c24], %204 {strides = array<i32>} : memref<1x8x32xf32, #tpu.memory_space<vmem>>, vector<1x8x8xf32>,
    return
  }
  func.func @transform_0(%arg0: i32, %arg1: i32) -> (i32, i32, i32) {
    %c0_i32 = arith.constant 0 : i32
    %c0_i32_0 = arith.constant 0 : i32
    %c0_i32_1 = arith.constant 0 : i32
    return %arg0, %c0_i32, %c0_i32_0 : i32, i32, i32
  }
  func.func @transform_1(%arg0: i32, %arg1: i32) -> (i32, i32, i32) {
    %c0_i32 = arith.constant 0 : i32
    %c0_i32_0 = arith.constant 0 : i32
    %c0_i32_1 = arith.constant 0 : i32
    %c0_i32_2 = arith.constant 0 : i32
    return %c0_i32, %c0_i32_0, %c0_i32_1 : i32, i32, i32
  }
  func.func @transform_2(%arg0: i32, %arg1: i32) -> (i32, i32, i32) {
    %c0_i32 = arith.constant 0 : i32
    %c0_i32_0 = arith.constant 0 : i32
    %c0_i32_1 = arith.constant 0 : i32
    %c0_i32_2 = arith.constant 0 : i32
    return %c0_i32, %c0_i32_0, %c0_i32_1 : i32, i32, i32
  }
  func.func @transform_3(%arg0: i32, %arg1: i32) -> (i32, i32, i32) {
    %c0_i32 = arith.constant 0 : i32
    %c0_i32_0 = arith.constant 0 : i32
    %c0_i32_1 = arith.constant 0 : i32
    return %arg0, %c0_i32, %c0_i32_0 : i32, i32, i32
  }
  func.func @transform_4(%arg0: i32, %arg1: i32) -> (i32, i32) {
    %c0_i32 = arith.constant 0 : i32
    %c0_i32_0 = arith.constant 0 : i32
    %c0_i32_1 = arith.constant 0 : i32
    return %c0_i32, %c0_i32_0 : i32, i32
  }
  func.func @transform_5(%arg0: i32, %arg1: i32) -> (i32, i32) {
    %c0_i32 = arith.constant 0 : i32
    %c0_i32_0 = arith.constant 0 : i32
    %c0_i32_1 = arith.constant 0 : i32
    return %c0_i32, %c0_i32_0 : i32, i32
  }
  func.func @transform_6(%arg0: i32, %arg1: i32) -> (i32, i32) {
    %c0_i32 = arith.constant 0 : i32
    %c0_i32_0 = arith.constant 0 : i32
    %c0_i32_1 = arith.constant 0 : i32
    return %c0_i32, %c0_i32_0 : i32, i32
  }
  func.func @transform_7(%arg0: i32, %arg1: i32) -> (i32, i32) {
    %c0_i32 = arith.constant 0 : i32
    %c0_i32_0 = arith.constant 0 : i32
    %c0_i32_1 = arith.constant 0 : i32
    return %c0_i32, %c0_i32_0 : i32, i32
  }
  func.func @transform_8(%arg0: i32, %arg1: i32) -> (i32, i32) {
    %c0_i32 = arith.constant 0 : i32
    %c0_i32_0 = arith.constant 0 : i32
    %c0_i32_1 = arith.constant 0 : i32
    return %c0_i32, %c0_i32_0 : i32, i32
  }
  func.func @transform_9(%arg0: i32, %arg1: i32) -> (i32, i32) {
    %c0_i32 = arith.constant 0 : i32
    %c0_i32_0 = arith.constant 0 : i32
    %c0_i32_1 = arith.constant 0 : i32
    return %c0_i32, %c0_i32_0 : i32, i32
  }
  func.func @transform_10(%arg0: i32, %arg1: i32) -> (i32, i32, i32) {
    %c0_i32 = arith.constant 0 : i32
    %c0_i32_0 = arith.constant 0 : i32
    return %arg0, %c0_i32, %arg1 : i32, i32, i32
  }
  func.func @transform_11(%arg0: i32, %arg1: i32) -> (i32, i32, i32, i32) {
    %c0_i32 = arith.constant 0 : i32
    %c0_i32_0 = arith.constant 0 : i32
    %c0_i32_1 = arith.constant 0 : i32
    return %arg0, %arg1, %c0_i32, %c0_i32_0 : i32, i32, i32, i32
  }
}

</mosaic_0001>

<bundles_post_ra>
// kernel: tpu_custom_call.1
= control target key start
LH: loop header
LB: loop body
LE: loop exit
PB: predicated region body
PF: predicated region fallthrough
CT: control target
= control target key end

     0   :  { %s3160_s0 = inlined_call_operand.hbm [shape: f32[2,8,32], index: 0, kind: input, shape index: {}]   ;;  %s3161_s1 = inlined_call_operand.hbm [shape: f32[4,32,32], index: 1, kind: input, shape index: {}]   ;;  %s3162_s2 = inlined_call_operand.hbm [shape: f32[4,1,32], index: 2, kind: input, shape index: {}]   ;;  %s3163_s3 = inlined_call_operand.hbm [shape: f32[2,1,8], index: 3, kind: input, shape index: {}]   ;;  %s3164_s4 = inlined_call_operand.hbm [shape: f32[8,8], index: 4, kind: input, shape index: {}]   ;;  %s3165_s5 = inlined_call_operand.vmem [shape: f32[8,16], index: 5, kind: input, shape index: {}]   ;;  %s3166_s6 = inlined_call_operand.hbm [shape: f32[8,8], index: 6, kind: input, shape index: {}]   ;;  %s3167_s7 = inlined_call_operand.hbm [shape: f32[8,8], index: 7, kind: input, shape index: {}]   ;;  %s3168_s8 = inlined_call_operand.vmem [shape: f32[1,8], index: 8, kind: input, shape index: {}]   ;;  %s3169_s9 = inlined_call_operand.vmem [shape: f32[1,8], index: 9, kind: input, shape index: {}]   ;;  %s3170_s10 = inlined_call_operand.hbm [shape: f32[2,8,32], index: 10, kind: output, shape index: {0}]   ;;  %s3171_s11 = inlined_call_operand.hbm [shape: f32[2,4,8,8], index: 11, kind: output, shape index: {1}]  }
   0x1   :  { %3176 = sst [smem:[#allocation27_spill]] %s3160_s0 }
   0x2   :  { %3177 = sst [smem:[#allocation28_spill]] %s3161_s1 }
   0x3   :  { %3178 = sst [smem:[#allocation29_spill]] %s3162_s2 }
   0x4   :  { %3179 = sst [smem:[#allocation30_spill]] %s3164_s4 }
   0x5   :  { %3180 = sst [smem:[#allocation31_spill]] %s3166_s6 }
   0x6   :  { %3181 = sst [smem:[#allocation32_spill]] %s3167_s7 }
   0x7   :  { %17 = vsyncpa [#allocation3], 0 }
   0x8   :  { %19 = vsyncpa [#allocation3 + $0x1], 0 }
   0x9   :  { %20 = vsyncpa [#allocation6], 0 }
   0xa   :  { %21 = vsyncpa [#allocation9], 0 }
   0xb   :  { %23 = vsyncpa [#allocation9 + $0x1], 0 }
   0xc   :  { %24 = vsyncpa [#allocation12], 0 }
   0xd   :  { %25 = vsyncpa [#allocation4], 0 }
   0xe   :  { %27 = vsyncpa [#allocation4 + $0x1], 0 }
   0xf   :  { %28 = vsyncpa [#allocation16], 0 }
  0x10   :  { %30 = vsyncpa [#allocation16 + $0x1], 0  ;;  %s2693_s8 = smov 0   ;;  %s2695_s17 = smov 0  }
  0x11   :  { %s2697_s9 = smov 0   ;;  %s2699_s18 = smov 0  }
  0x12   :  { %s2701_s19 = smov 0   ;;  %s2703_s20 = smov 0  }
  0x13 LB: > { %3182 = sst [smem:[#allocation24_spill]] %s2597_s9  ;;  %s2724_s21 = sadd.s32 4294967295, %s2609_s20   ;;  %s2609_s20 = sphi %s2703_s20, %s36_s20   ;;  %s2605_s19 = sphi %s2701_s19, %s3214_s19   ;;  %s2601_s18 = sphi %s2699_s18, %s3213_s18   ;;  %s2597_s9 = sphi %s2697_s9, %s3209_s9   ;;  %s2593_s17 = sphi %s2695_s17, %s3212_s17   ;;  %s2589_s8 = sphi %s2693_s8, %s3211_s8  }
  0x14   : > { %p1959_p0 = scmp.ge.s32.totalorder %s2609_s20, 1  ;;  %p3172_p1 = scmp.eq.s32.totalorder %s2724_s21, 0 }
  0x15   : > { %p329_p2 = scmp.lt.s32.totalorder %s2609_s20, 3  ;;  %s2611_s23 = smov [#allocation5]  }
  0x16   : > { %s341_s24 = sshll.u32 %s2611_s23, 4  ;;  %s2612_s26 = smov [#allocation10]   ;;  %s342_s24 = int_to_ptr.vmem [resolvable:$true] %s341_s24 }
  0x17   : > { %p2729_p3 = pnand %p1959_p0, %p329_p2  ;;  %s368_s27 = sshll.u32 %s2612_s26, 4  ;;  %s369_s27 = int_to_ptr.vmem [resolvable:$true] %s368_s27 }
  0x18   : > { %s2613_s28 = smov [#allocation11]   ;;  %s2308_s12 = scalar_lea.vmem %s342_s24, 2048 }
  0x19   : > { %s3183_s22 = scalar_select %p2729_p3, 1, 0 }
  0x1a   : > { %p2173_p4 = pneg %p2729_p3  ;;  %s382_s29 = sshll.u32 %s2613_s28, 4  ;;  %s383_s29 = int_to_ptr.vmem [resolvable:$true] %s382_s29 }
  0x1b   : > { %p2309_p8 = scmp.ne.s32.totalorder %s342_s24, %s2308_s12  ;;  %p2316_p11 = scmp.lt.s32.totalorder %s342_s24, %s342_s24 }
  0x1c   : > { %p2738_p6 = pnand %p2173_p4, %p3172_p1  ;;  %p2317_p12 = scmp.lt.s32.totalorder %s2308_s12, %s2308_s12 }
  0x1e   : > { %p2744_p7 = pneg %p2738_p6  ;;  %p2318_p13 = por %p2317_p12, %p2316_p11 }
  0x20   : > { %p2311_p9 = pnand %p2309_p8, %p2744_p7 }
  0x22   : > { %p2312_p10 = pneg %p2311_p9 }
  0x24   : > { %p2319_p0 = pnand %p2318_p13, %p2312_p10 }
  0x26   : > { %2322 = shalt.err (!%p2319_p0)
}
  0x27   : > { %s2614_s13 = smov 128   ;;  %s2615_s14 = smov 8  }
  0x28   : > { %s3186_s1 = sld [smem:[#allocation28_spill]]  ;;  %s2334_s23 = scalar_lea.vmem %s369_s27, 128 }
  0x29   : > { %p2335_p2 = scmp.ne.s32.totalorder %s369_s27, %s2334_s23  ;;  %p2342_p9 = scmp.lt.s32.totalorder %s369_s27, %s369_s27 }
  0x2a   : > { %p2343_p5 = scmp.lt.s32.totalorder %s2334_s23, %s2334_s23 }
  0x2b   : > { %p2337_p4 = pnand %p2335_p2, %p2744_p7 }
  0x2c   : > { %p2344_p1 = por %p2343_p5, %p2342_p9 }
  0x2d   : > { %p2338_p8 = pneg %p2337_p4 }
  0x2e   : > { %2176 = dma.hbm_to_vmem [thread:$0]  (!%p2738_p6), %s3186_s1, 2048, %s342_s24, [#allocation6], %s2614_s13, %s2614_s13, %s2615_s14  }
  0x2f   : > { %p2345_p11 = pnand %p2344_p1, %p2338_p8 }
  0x31   : > { %2348 = shalt.err (!%p2345_p11)
}
  0x32   : > { %s3187_s4 = sld [smem:[#allocation30_spill]]  ;;  %s2360_s12 = scalar_lea.vmem %s383_s29, 128 }
  0x33   : > { %p2361_p10 = scmp.ne.s32.totalorder %s383_s29, %s2360_s12  ;;  %p2368_p0 = scmp.lt.s32.totalorder %s383_s29, %s383_s29 }
  0x34   : > { %p2369_p2 = scmp.lt.s32.totalorder %s2360_s12, %s2360_s12 }
  0x35   : > { %p2363_p12 = pnand %p2361_p10, %p2744_p7 }
  0x36   : > { %p2370_p4 = por %p2369_p2, %p2368_p0 }
  0x37   : > { %p2364_p13 = pneg %p2363_p12 }
  0x38   : > { %2182 = dma.hbm_to_vmem [thread:$0]  (!%p2738_p6), %s3187_s4, 128, %s369_s27, [#allocation9]  }
  0x39   : > { %p2371_p3 = pnand %p2370_p4, %p2364_p13 }
  0x3b   : > { %2374 = shalt.err (!%p2371_p3)
}
  0x3c   : > { %s3188_s6 = sld [smem:[#allocation31_spill]]  ;;  %s2616_s14 = smov [#allocation7]  }
  0x3d   : > { %s354_s27 = sshll.u32 %s2616_s14, 4  ;;  %s355_s27 = int_to_ptr.vmem [resolvable:$true] %s354_s27 }
  0x3e   : > { %s2386_s15 = scalar_lea.vmem %s355_s27, 64  ;;  %p2394_p9 = scmp.lt.s32.totalorder %s355_s27, %s355_s27 }
  0x3f   : > { %p2387_p1 = scmp.ne.s32.totalorder %s355_s27, %s2386_s15  ;;  %p2395_p11 = scmp.lt.s32.totalorder %s2386_s15, %s2386_s15 }
  0x41   : > { %p2389_p5 = pnand %p2387_p1, %p2744_p7  ;;  %p2396_p10 = por %p2395_p11, %p2394_p9 }
  0x42   : > { %2185 = dma.hbm_to_vmem [thread:$0]  (!%p2738_p6), %s3188_s6, 128, %s383_s29, [#allocation12]  }
  0x43   : > { %p2390_p8 = pneg %p2389_p5 }
  0x45   : > { %p2397_p12 = pnand %p2396_p10, %p2390_p8 }
  0x47   : > { %2400 = shalt.err (!%p2397_p12)
}
  0x48   : > { %s2617_s16 = smov 16   ;;  %s2618_s23 = smov 1  }
  0x49   : > { %s3189_s2 = sld [smem:[#allocation29_spill]]  ;;  %s2619_s28 = smov [#allocation13]  }
  0x4a   : > { %s393_s12 = sshll.u32 %s2619_s28, 4  ;;  %s394_s12 = int_to_ptr.vmem [resolvable:$true] %s393_s12 }
  0x4b   : > { %s2412_s24 = scalar_lea.vmem %s394_s12, 128  ;;  %p2420_p2 = scmp.lt.s32.totalorder %s394_s12, %s394_s12 }
  0x4c   : > { %p2413_p3 = scmp.ne.s32.totalorder %s394_s12, %s2412_s24  ;;  %p2421_p4 = scmp.lt.s32.totalorder %s2412_s24, %s2412_s24 }
  0x4e   : > { %p2415_p13 = pnand %p2413_p3, %p2744_p7  ;;  %p2422_p1 = por %p2421_p4, %p2420_p2 }
  0x4f   : > { %2179 = dma.hbm_to_vmem [thread:$0]  (!%p2738_p6), %s3189_s2, 64, %s355_s27, [#allocation6], %s2617_s16, %s2617_s16, %s2618_s23  }
  0x50   : > { %p2416_p0 = pneg %p2415_p13 }
  0x52   : > { %p2423_p5 = pnand %p2422_p1, %p2416_p0 }
  0x54   : > { %2426 = shalt.err (!%p2423_p5)
}
  0x55   : > { %s3190_s7 = sld [smem:[#allocation32_spill]]  ;;  %s1958_s30 = sadd.s32 4294967294, %s2609_s20  }
  0x56   : > { %s48_s27 = sadd.s32 1, %s2605_s19  ;;  %s55_s25 = sadd.s32 1, %s2597_s9 }
  0x57   : > { %p50_p7 = scmp.ge.s32.totalorder %s48_s27, 2  ;;  %p62_p8 = scmp.ne.s32.totalorder %s2597_s9, %s2593_s17 }
  0x58   : > { %p63_p9 = scmp.eq.s32.totalorder %s2609_s20, 0  ;;  %p68_p11 = scmp.ne.s32.totalorder %s2593_s17, %s2589_s8 }
  0x59   : > { %s3216_s27 = smov (%p50_p7, %s48_s27), 0  ;;  %p3193_p12 = scmp.eq.s32.totalorder %s2724_s21, 0 }
  0x5a   : > { %3191 = sst [smem:[#allocation25_spill]] %s3216_s27  ;;  %p2793_p10 = por %p63_p9, %p62_p8 }
  0x5b   : > { %2188 = dma.hbm_to_vmem [thread:$0]  (!%p2738_p6), %s3190_s7, 128, %s394_s12, [#allocation12]  }
  0x5c   : > { %p2799_p6 = por %p3193_p12, %p68_p11  ;;  %s52_s23 = ssub.s32 %s2605_s19, %s3216_s27 }
  0x5d   : > { %p288_p3 = scmp.eq.s32.totalorder %s2724_s21, 1  ;;  %p53_p13 = scmp.eq.s32.totalorder %s52_s23, 0 }
  0x5e   : > { %p294_p0 = scmp.eq.s32.totalorder %s1958_s30, 1  ;;  %p2208_p4 = scmp.lt.s32.totalorder %s2609_s20, 2 }
  0x5f   : > { %p2806_p2 = por %p288_p3, %p62_p8  ;;  %s410_s12 = sand.u32 1, %s2597_s9  }
  0x60   : > { %s2812_s29 = scalar_select %p53_p13, %s2597_s9, %s55_s25  }
  0x61   : > { %p2814_p1 = por %p294_p0, %p68_p11  ;;  %s1966_s24 = sshll.u32 %s410_s12, 3 }
  0x62   : > { %3196 = sst [smem:[#allocation26_spill]] %s2812_s29  ;;  %s1967_s13 = sshll.u32 %s2605_s19, 7 }
  0x63   : > { %s3198_s0 = sld [smem:[#allocation27_spill]]  ;;  %s414_s23 = scalar_lea.vmem [#allocation2], %s1966_s24 }
  0x64   : > { %s421_s30 = sshll.u32 %s414_s23, 4  ;;  %p2825_p5 = pnand %p2208_p4, %p2793_p10  ;;  %s422_s30 = int_to_ptr.vmem [resolvable:$true] %s421_s30 }
  0x65   : > { %s428_s25 = sand.u32 1, %s2609_s20   ;;  %s411_s6 = scalar_lea.sflag [#allocation3], %s410_s12 }
  0x66   : > { %p2429_p7 = pneg %p2825_p5  ;;  %s2440_s7 = scalar_lea.vmem %s422_s30, 128 }
  0x67   : > { %p2441_p8 = scmp.ne.s32.totalorder %s422_s30, %s2440_s7  ;;  %s2620_s1 = smov [#allocation2]  }
  0x68   : > { %s2445_s24 = sshll.u32 %s2620_s1, 4  ;;  %s2446_s24 = int_to_ptr.vmem [resolvable:$false] %s2445_s24 }
  0x69   : > { %s419_s2 = scalar_lea.hbm %s3198_s0, %s1967_s13  ;;  %p2443_p9 = pnand %p2441_p8, %p2429_p7 }
  0x6a   : > { %s2447_s15 = scalar_lea.vmem %s2446_s24, 256  ;;  %p2448_p10 = scmp.lt.s32.totalorder %s422_s30, %s2446_s24 }
  0x6b   : > { %p2444_p11 = pneg %p2443_p9  ;;  %p2449_p12 = scmp.lt.s32.totalorder %s2447_s15, %s2440_s7 }
  0x6d   : > { %p2450_p3 = por %p2449_p12, %p2448_p10 }
  0x6f   : > { %p2451_p13 = pnand %p2450_p3, %p2444_p11 }
  0x71   : > { %2454 = shalt.err (!%p2451_p13)
}
  0x72   : > { %2192 = dma.hbm_to_vmem [thread:$0]  (!%p2825_p5), %s419_s2, 128, %s422_s30, %s411_s6  }
  0x73   : > { %s1968_s13 = sshll.u32 %s2605_s19, 4  ;;  %s431_s14 = scalar_lea.vmem [#allocation8], %s410_s12 }
  0x74   : > { %s438_s23 = sshll.u32 %s431_s14, 4  ;;  %s436_s29 = scalar_lea.hbm %s3163_s3, %s1968_s13  ;;  %s439_s23 = int_to_ptr.vmem [resolvable:$true] %s438_s23 }
  0x75   : > { %s429_s1 = scalar_lea.sflag [#allocation9], %s428_s25  ;;  %s2468_s9 = scalar_lea.vmem %s439_s23, 16 }
  0x76   : > { %p2469_p0 = scmp.ne.s32.totalorder %s439_s23, %s2468_s9  ;;  %s2621_s7 = smov [#allocation8]  }
  0x77   : > { %s2473_s24 = sshll.u32 %s2621_s7, 4  ;;  %s2474_s24 = int_to_ptr.vmem [resolvable:$false] %s2473_s24 }
  0x78   : > { %p2471_p4 = pnand %p2469_p0, %p2429_p7  ;;  %s2475_s15 = scalar_lea.vmem %s2474_s24, 32 }
  0x79   : > { %p2476_p9 = scmp.lt.s32.totalorder %s439_s23, %s2474_s24  ;;  %p2477_p11 = scmp.lt.s32.totalorder %s2475_s15, %s2468_s9 }
  0x7a   : > { %p2472_p8 = pneg %p2471_p4 }
  0x7b   : > { %p2478_p10 = por %p2477_p11, %p2476_p9 }
  0x7d   : > { %p2479_p12 = pnand %p2478_p10, %p2472_p8 }
  0x7f   : > { %2482 = shalt.err (!%p2479_p12)
}
  0x80   : > { %2195 = dma.hbm_to_vmem [thread:$0]  (!%p2825_p5), %s436_s29, 16, %s439_s23, %s429_s1  }
  0x81   : > { %p3200_p3 = scmp.ne.s32.totalorder %s3183_s22, 0 }
  0x82   : > { %s2849_s0 = sand.u32 (!%p3200_p3), 1, %s2593_s17  }
  0x83   : > { %447 = sbr.rel (%p3200_p3) target bundleno = 3081 (0xc09), region = 60  ;;  %s1970_s2 = sshll.u32 (!%p3200_p3), %s2849_s0, 3 }
  0x84   : > { %s450_s6 = scalar_lea.sflag (!%p3200_p3), [#allocation3], %s2849_s0  ;;  %s453_s9 = scalar_lea.vmem (!%p3200_p3), [#allocation2], %s1970_s2 }
  0x88   : > { %2560 = dma.done.wait (%p2799_p6), %s450_s6, 128  }
  0x89   : > { %2562 = vsyncadd (%p2799_p6), %s450_s6, 4294967168  ;;  %p3201_p5 = scmp.eq.s32.totalorder %s2724_s21, 0 }
  0x8b   : > { %2564 = dma.done.wait (%p3201_p5), [#allocation6], 2112   ;;  %p3202_p7 = pmov %p3201_p5 }
  0x8c   : > { %s466_s4 = sand.u32 1, %s2724_s21   ;;  %s469_s27 = scalar_lea.vmem [#allocation8], %s2849_s0 }
  0x8d   : > { %2566 = vsyncadd (%p3202_p7), [#allocation6], 4294965184  ;;  %s467_s22 = scalar_lea.sflag [#allocation9], %s466_s4 }
  0x8e   : > { %2568 = dma.done.wait (%p2799_p6), %s467_s22, 16  }
  0x8f   : > { %2570 = vsyncadd (%p2799_p6), %s467_s22, 4294967280  ;;  %p3203_p13 = pmov %p3201_p5 }
  0x90   : > { %p3204_p0 = pmov %p3201_p5 }
  0x91   : > { %2572 = dma.done.wait (%p3203_p13), [#allocation9], 128  }
  0x92   : > { %2574 = vsyncadd (%p3204_p0), [#allocation9], 4294967168  ;;  %p3205_p4 = pmov %p3204_p0 }
  0x93   : > { %p3206_p8 = pmov %p3204_p0 }
  0x94   : > { %2576 = dma.done.wait (%p3205_p4), [#allocation12], 256  }
  0x95   : > { %2578 = vsyncadd (%p3206_p8), [#allocation12], 4294967040  ;;  %v2622_v0 = vmov 0.0   ;;  %vm2623_vm0 = vmmov 0   ;;  %v542_v1 = vld [vmem:[#allocation5 + $0x18] sm:$0xff]  ;;  %v541_v2 = vld [vmem:[#allocation5 + $0x10] sm:$0xff] }
  0x96   : > { %2061 = vmatprep.subr.mxu0 %v2622_v0  ;;  %2069 = vmatprep.mubr.msk.f32.mxu0 %vm2623_vm0, %v2622_v0  ;;  %v540_v3 = vld [vmem:[#allocation5 + $0x8] sm:$0xff]  ;;  %v539_v4 = vld [vmem:[#allocation5] sm:$0xff]  ;;  %v530_v5 = vld [vmem:[%s453_s9] sm:$0xff]  ;;  %vm551_vm1 = vcmask 261120   ;;  %s2624_s21 = smov 24   ;;  %s2625_s16 = smov 120  }
  0x97   : > { %2072 = vmatprep.subr.mxu1 %v2622_v0  ;;  %2074 = vmatprep.mubr.msk.f32.mxu1 %vm2623_vm0, %v2622_v0  ;;  %v2885_v6 = vld [vmem:[#allocation13] sm:$0xff]  ;;  %v1985_v9 = vld [vmem:[#allocation5 + $0x28] sm:$0xff]  ;;  %v1984_v10 = vld [vmem:[#allocation5 + $0x20] sm:$0xff]  ;;  %s2626_s29 = smov 104   ;;  %s2627_s12 = smov 8   ;;  %vm640_vm2 = vcmask 64512  }
  0x98   : > { %2062 = vmatpush3.msra.mxu0 %v542_v1  ;;  %v1987_v7 = vld [vmem:[#allocation5 + $0x38] sm:$0xff]  ;;  %627 = vrot.lane.b32.xlu0 %v2885_v6, %s2624_s21  ;;  %v1986_v8 = vld [vmem:[#allocation5 + $0x30] sm:$0xff]  ;;  %v1996_v13 = vld [vmem:[#allocation5 + $0x48] sm:$0xff]  ;;  %vm651_vm3 = vcmask 130048   ;;  %s1977_s30 = sshll.u32 %s2849_s0, 5  ;;  %s2628_s13 = smov 112  }
  0x99   : > { %2063 = vmatprep.subr.mxu0 %v2622_v0  ;;  %v1998_v11 = vld [vmem:[#allocation5 + $0x58] sm:$0xff]  ;;  %v1997_v12 = vld [vmem:[#allocation5 + $0x50] sm:$0xff]  ;;  %v1995_v14 = vld [vmem:[#allocation5 + $0x40] sm:$0xff]  ;;  %s2945_s25 = scalar_lea.vmem [#allocation15], %s1977_s30  ;;  %s2629_s1 = smov 16  }
  0x9a   : > { %2064 = vmatpush3.msra.mxu0 %v541_v2  ;;  %v2009_v15 = vld [vmem:[#allocation5 + $0x78] sm:$0xff]  ;;  %v2008_v16 = vld [vmem:[#allocation5 + $0x70] sm:$0xff]  ;;  %v2007_v17 = vld [vmem:[#allocation5 + $0x68] sm:$0xff]  ;;  %s1748_s7 = sshll.u32 %s2945_s25, 4  ;;  %s2024_s24 = sshll.u32 %s2601_s18, 9  ;;  %s3077_s7 = int_to_ptr.vmem [resolvable:$true] %s1748_s7 }
  0x9b   : > { %2065 = vmatprep.subr.mxu0 %v2622_v0  ;;  %v2006_v18 = vld [vmem:[#allocation5 + $0x60] sm:$0xff]  ;;  %v2920_v32 = vld [vmem:[#allocation11] sm:$0xff]  ;;  %s3083_s9 = scalar_lea.hbm %s3171_s11, %s2024_s24  ;;  %s1719_s4 = scalar_lea.sflag [#allocation16], %s2849_s0 }
  0x9c   : > { %2066 = vmatpush3.msra.mxu0 %v540_v3  ;;  %v1978_v19 = vld [vmem:[#allocation7] ss:$0 sm:$0xff]  ;;  %v532_v25 = vld [vmem:[#allocation10] sm:$0xff]  ;;  %v1989_v33 = vld [vmem:[#allocation7 + $0x1] ss:$0 sm:$0xff]  ;;  %s2483_s22 = scalar_lea.vmem %s3077_s7, 512 }
  0x9d   : > { %2067 = vmatprep.subr.mxu0 %v2622_v0  ;;  %v2942_v44 = vld [vmem:[%s469_s27] ss:$0 sm:$0xff]  ;;  %v2000_v51 = vld [vmem:[#allocation7 + $0x2] ss:$0 sm:$0xff]  ;;  %p2484_p6 = scmp.ne.s32.totalorder %s3077_s7, %s2483_s22  ;;  %s2630_s27 = smov [#allocation15]  }
  0x9e   : > { %2068 = vmatpush3.msra.mxu0 %v539_v4  ;;  %v533_v61 = vld [vmem:[%s3165_s5] sm:$0xff] }
  0x9f   : > { %2070 = vmatmul.mubr.msk.f32.vlgmr.msra.gmra.mxu0 %vm551_vm1, %v530_v5  ;;  %2082 = vmatprep.subr.mxu0 %v2622_v0  ;;  %p2485_p9 = pnand %p2484_p6, %p2806_p2 }
  0xa0   : > { %2083 = vmatpush3.msra.mxu0 %v1987_v7  ;;  %2090 = vmatprep.mubr.msk.f32.mxu0 %vm2623_vm0, %v2622_v0 }
  0xa1   : > { %2084 = vmatprep.subr.mxu0 %v2622_v0  ;;  %p2486_p11 = pneg %p2485_p9 }
  0xa2   : > { %2085 = vmatpush3.msra.mxu0 %v1986_v8 }
  0xa3   : > { %2086 = vmatprep.subr.mxu0 %v2622_v0 }
  0xa4   : > { %2087 = vmatpush3.msra.mxu0 %v1985_v9 }
  0xa5   : > { %2088 = vmatprep.subr.mxu0 %v2622_v0 }
  0xa6   : > { %2089 = vmatpush3.msra.mxu0 %v1984_v10 }
  0xa7   : > { %2091 = vmatmul.mubr.msk.f32.vlgmr.msra.gmra.mxu0 %vm551_vm1, %v530_v5  ;;  %2103 = vmatprep.subr.mxu0 %v2622_v0 }
  0xa8   : > { %2104 = vmatpush3.msra.mxu0 %v1998_v11  ;;  %2111 = vmatprep.mubr.msk.f32.mxu0 %vm2623_vm0, %v2622_v0 }
  0xa9   : > { %2105 = vmatprep.subr.mxu0 %v2622_v0 }
  0xaa   : > { %2106 = vmatpush3.msra.mxu0 %v1997_v12 }
  0xab   : > { %2107 = vmatprep.subr.mxu0 %v2622_v0 }
  0xac   : > { %2108 = vmatpush3.msra.mxu0 %v1996_v13 }
  0xad   : > { %2109 = vmatprep.subr.mxu0 %v2622_v0 }
  0xae   : > { %2110 = vmatpush3.msra.mxu0 %v1995_v14 }
  0xaf   : > { %2112 = vmatmul.mubr.msk.f32.vlgmr.msra.gmra.mxu0 %vm551_vm1, %v530_v5  ;;  %2124 = vmatprep.subr.mxu0 %v2622_v0 }
  0xb0   : > { %2125 = vmatpush3.msra.mxu0 %v2009_v15  ;;  %2132 = vmatprep.mubr.msk.f32.mxu0 %vm2623_vm0, %v2622_v0 }
  0xb1   : > { %2126 = vmatprep.subr.mxu0 %v2622_v0 }
  0xb2   : > { %2127 = vmatpush3.msra.mxu0 %v2008_v16 }
  0xb3   : > { %2128 = vmatprep.subr.mxu0 %v2622_v0 }
  0xb4   : > { %2129 = vmatpush3.msra.mxu0 %v2007_v17 }
  0xb5   : > { %2130 = vmatprep.subr.mxu0 %v2622_v0 }
  0xb6   : > { %2131 = vmatpush3.msra.mxu0 %v2006_v18 }
  0xb7   : > { %2133 = vmatmul.mubr.msk.f32.vlgmr.msra.gmra.mxu0 %vm551_vm1, %v530_v5 }
 0x10a   : > { %v2912_v21 = vpop.permute.xlu0 %627 }
 0x15f   : > { %v621_v20 = vpop.f32.mrf.mxu0 }
 0x160   : > { %v622_v22 = vadd.f32 %v1978_v19, %v621_v20 }
 0x161   : > { %v2071_v23 = vpop.f32.mrf.mxu0 }
 0x162   : > { %643 = vrot.lane.b32.xlu1 %v622_v22, %s2625_s16  ;;  %v630_v24 = vmul.f32 %v2912_v21, %v622_v22  ;;  %v625_v35 = vmul.f32 %v622_v22, %v2920_v32 }
 0x164   : > { %632 = vrot.lane.b32.xlu0 %v630_v24, %s2626_s29 }
 0x166   : > { %647 = vrot.lane.b32.xlu1 %v532_v25, %s2627_s12 }
 0x167   : > { %v930_v26 = vpop.f32.mrf.mxu0 }
 0x168   : > { %v2923_v37 = vadd.f32 %v1989_v33, %v930_v26 }
 0x169   : > { %v2092_v27 = vpop.f32.mrf.mxu0 }
 0x16a   : > { %v935_v41 = vmul.f32 %v2923_v37, %v2912_v21  ;;  %v934_v50 = vmul.f32 %v2923_v37, %v2920_v32 }
 0x16f   : > { %v1218_v28 = vpop.f32.mrf.mxu0 }
 0x170   : > { %v2955_v53 = vadd.f32 %v2000_v51, %v1218_v28  ;;  %v2011_v28 = vld [vmem:[#allocation7 + $0x3] ss:$0 sm:$0xff] }
 0x171   : > { %v2113_v29 = vpop.f32.mrf.mxu0 }
 0x172   : > { %v1223_v55 = vmul.f32 %v2955_v53, %v2912_v21  ;;  %v1222_v17 = vmul.f32 %v2955_v53, %v2920_v32 }
 0x177   : > { %v2918_v30 = vpop.f32.mrf.mxu0 }
 0x178   : > { %v2999_v29 = vadd.f32 %v2011_v28, %v2918_v30 }
 0x179   : > { %v2134_v31 = vpop.f32.mrf.mxu0 }
 0x17a   : > { %v1511_v31 = vmul.f32 %v2999_v29, %v2912_v21 }
 0x1d4   : > { %v644_v34 = vpop.permute.xlu1 %643 }
 0x1d6   : > { %v633_v36 = vpop.permute.xlu0 %632 }
 0x1d7   : > { %v635_v38 = vadd.f32 %v633_v36, %v625_v35 }
 0x1d8   : > { %v2925_v39 = vpop.permute.xlu1 %647 }
 0x1d9   : > { %637 = vrot.lane.b32.xlu0 %v635_v38, %s2627_s12  ;;  %v650_v40 = vsel %vm640_vm2, %v644_v34, %v2925_v39 }
 0x1da   : > { %2073 = vmatpush3.xpose.msk.msra.mxu1 %vm651_vm3, %v650_v40 }
 0x1db   : > { %2077 = vmatprep.subr.mxu1 %v2622_v0 }
 0x1dd   : > { %937 = vrot.lane.b32.xlu0 %v935_v41, %s2626_s29 }
 0x24b   : > { %v638_v42 = vpop.permute.xlu0 %637 }
 0x24c   : > { %v641_v43 = vsel %vm640_vm2, %v622_v22, %v638_v42 }
 0x24d   : > { %2075 = vmatmul.mubr.msk.f32.vlgmr.msra.gmra.mxu1 %vm651_vm3, %v641_v43 }
 0x24e   : > { %2079 = vmatprep.mubr.msk.f32.mxu1 %vm2623_vm0, %v2622_v0 }
 0x24f   : > { %v938_v52 = vpop.permute.xlu0 %937 }
 0x250   : > { %v940_v54 = vadd.f32 %v938_v52, %v934_v50 }
 0x30d   : > { %v724_v45 = vpop.f32.mrf.mxu1 }
 0x30e   : > { %v728_v46 = vmul.f32 0.35355338, %v724_v45 }
 0x30f   : > { %v2076_v47 = vpop.f32.mrf.mxu1 }
 0x310   : > { %v735_v48 = vadd.f32 %v2942_v44, %v728_v46  ;;  %v1510_v47 = vmul.f32 %v2999_v29, %v2920_v32 }
 0x312   : > { %736 = vst.msk [vmem:[%s2945_s25] sm:$0xff] %vm640_vm2, %v735_v48  ;;  %v737_v49 = vsel %vm640_vm2, %v735_v48, -inf }
 0x313   : > { %738 = vmax.xlane.f32.xlu1 %v737_v49 }
 0x324   : > { %748 = vrot.lane.b32.xlu1 %v622_v22, %s2628_s13 }
 0x328   : > { %947 = vrot.lane.b32.xlu1 %v2923_v37, %s2625_s16 }
 0x32c   : > { %942 = vrot.lane.b32.xlu1 %v940_v54, %s2627_s12 }
 0x330   : > { %1225 = vrot.lane.b32.xlu1 %v1223_v55, %s2626_s29 }
 0x39c   : > { %v739_v56 = vpop.xlane.xlu1 %738 }
 0x39d   : > { %v740_v57 = vsub.f32 %v735_v48, %v739_v56 }
 0x39f   : > { %v741_v58 = vmul.f32 1.442695, %v740_v57 }
 0x3a0   : > { %v749_v63 = vpop.permute.xlu1 %748 }
 0x3a1   : > { %2281 = vpow2.f32 %v741_v58 }
 0x3a4   : > { %v948_v3 = vpop.permute.xlu1 %947 }
 0x3a5   : > { %v950_v7 = vsel %vm640_vm2, %v948_v3, %v2925_v39 }
 0x3a8   : > { %v943_v8 = vpop.permute.xlu1 %942 }
 0x3a9   : > { %v945_v9 = vsel %vm640_vm2, %v2923_v37, %v943_v8 }
 0x3ac   : > { %v1226_v18 = vpop.permute.xlu1 %1225 }
 0x3ad   : > { %v1228_v19 = vadd.f32 %v1226_v18, %v1222_v17 }
 0x3ae   : > { %v2282_v59 = vpop.eup %2281 }
 0x3af   : > { %v743_v60 = vsel %vm640_vm2, %v2282_v59, 0.0 }
 0x3b0   : > { %744 = vadd.xlane.f32.xlu0 %v743_v60 }
 0x3c6   : > { %752 = vrot.lane.b32.xlu0 %v533_v61, %s2627_s12 }
 0x439   : > { %v745_v62 = vpop.xlane.xlu0 %744 }
 0x43a   : > { %2283 = vrcp.f32 %v745_v62 }
 0x43d   : > { %v2966_v1 = vpop.permute.xlu0 %752 }
 0x43e   : > { %v755_v2 = vsel %vm640_vm2, %v749_v63, %v2966_v1 }
 0x43f   : > { %2078 = vmatpush3.msra.mxu1 %v755_v2 }
 0x440   : > { %2093 = vmatprep.subr.mxu1 %v2622_v0 }
 0x447   : > { %v2284_v4 = vpop.eup %2283 }
 0x448   : > { %v747_v5 = vmul.f32 %v2284_v4, %v2282_v59 }
 0x44a   : > { %2080 = vmatmul.mubr.msk.f32.vlgmr.msra.gmra.mxu1 %vm640_vm2, %v747_v5 }
 0x44b   : > { %2094 = vmatpush3.xpose.msk.msra.mxu1 %vm651_vm3, %v950_v7  ;;  %2095 = vmatprep.mubr.msk.f32.mxu1 %vm2623_vm0, %v2622_v0 }
 0x44c   : > { %2098 = vmatprep.subr.mxu1 %v2622_v0 }
 0x44e   : > { %2096 = vmatmul.mubr.msk.f32.vlgmr.msra.gmra.mxu1 %vm651_vm3, %v945_v9 }
 0x44f   : > { %2100 = vmatprep.mubr.msk.f32.mxu1 %vm2623_vm0, %v2622_v0 }
 0x50a   : > { %v2983_v10 = vpop.f32.mrf.mxu1 }
 0x50c   : > { %v2081_v11 = vpop.f32.mrf.mxu1 }
 0x50e   : > { %v1023_v12 = vpop.f32.mrf.mxu1 }
 0x50f   : > { %v1027_v13 = vmul.f32 0.35355338, %v1023_v12 }
 0x510   : > { %v2097_v14 = vpop.f32.mrf.mxu1 }
 0x511   : > { %v1028_v15 = vadd.f32 %v2942_v44, %v1027_v13 }
 0x513   : > { %1993 = vst.msk [vmem:[%s2945_s25 + $0x8] sm:$0xff] %vm640_vm2, %v1028_v15  ;;  %v1031_v16 = vsel %vm640_vm2, %v1028_v15, -inf }
 0x514   : > { %1032 = vmax.xlane.f32.xlu0 %v1031_v16 }
 0x52a   : > { %1042 = vrot.lane.b32.xlu0 %v2923_v37, %s2628_s13 }
 0x52e   : > { %1230 = vrot.lane.b32.xlu0 %v1228_v19, %s2627_s12 }
 0x59d   : > { %v1033_v20 = vpop.xlane.xlu0 %1032 }
 0x59e   : > { %v1034_v22 = vsub.f32 %v1028_v15, %v1033_v20 }
 0x5a0   : > { %v1035_v23 = vmul.f32 1.442695, %v1034_v22 }
 0x5a1   : > { %v1043_v24 = vpop.permute.xlu0 %1042 }
 0x5a2   : > { %2285 = vpow2.f32 %v1035_v23  ;;  %v1045_v25 = vsel %vm640_vm2, %v1043_v24, %v2966_v1 }
 0x5a3   : > { %2099 = vmatpush3.msra.mxu1 %v1045_v25 }
 0x5a4   : > { %2114 = vmatprep.subr.mxu1 %v2622_v0 }
 0x5a5   : > { %v1231_v37 = vpop.permute.xlu0 %1230 }
 0x5a6   : > { %v1233_v21 = vsel %vm640_vm2, %v2955_v53, %v1231_v37 }
 0x5af   : > { %v2286_v26 = vpop.eup %2285 }
 0x5b0   : > { %v1037_v27 = vsel %vm640_vm2, %v2286_v26, 0.0 }
 0x5b1   : > { %1038 = vadd.xlane.f32.xlu1 %v1037_v27 }
 0x5c2   : > { %1235 = vrot.lane.b32.xlu1 %v2955_v53, %s2625_s16 }
 0x5c6   : > { %1513 = vrot.lane.b32.xlu1 %v1511_v31, %s2626_s29 }
 0x63a   : > { %v1039_v33 = vpop.xlane.xlu1 %1038 }
 0x63b   : > { %2287 = vrcp.f32 %v1039_v33 }
 0x63e   : > { %v1236_v35 = vpop.permute.xlu1 %1235 }
 0x63f   : > { %v1238_v38 = vsel %vm640_vm2, %v1236_v35, %v2925_v39 }
 0x642   : > { %v1514_v48 = vpop.permute.xlu1 %1513 }
 0x643   : > { %v1516_v49 = vadd.f32 %v1514_v48, %v1510_v47 }
 0x648   : > { %v2288_v34 = vpop.eup %2287 }
 0x649   : > { %v1041_v36 = vmul.f32 %v2288_v34, %v2286_v26 }
 0x64b   : > { %2101 = vmatmul.mubr.msk.f32.vlgmr.msra.gmra.mxu1 %vm640_vm2, %v1041_v36 }
 0x64c   : > { %2115 = vmatpush3.xpose.msk.msra.mxu1 %vm651_vm3, %v1238_v38  ;;  %2116 = vmatprep.mubr.msk.f32.mxu1 %vm2623_vm0, %v2622_v0 }
 0x64d   : > { %2119 = vmatprep.subr.mxu1 %v2622_v0 }
 0x64f   : > { %2117 = vmatmul.mubr.msk.f32.vlgmr.msra.gmra.mxu1 %vm651_vm3, %v1233_v21 }
 0x650   : > { %2121 = vmatprep.mubr.msk.f32.mxu1 %vm2623_vm0, %v2622_v0 }
 0x70b   : > { %v3018_v30 = vpop.f32.mrf.mxu1 }
 0x70d   : > { %v2102_v40 = vpop.f32.mrf.mxu1 }
 0x70f   : > { %v1311_v41 = vpop.f32.mrf.mxu1 }
 0x710   : > { %v1315_v42 = vmul.f32 0.35355338, %v1311_v41 }
 0x711   : > { %v2118_v43 = vpop.f32.mrf.mxu1 }
 0x712   : > { %v1316_v45 = vadd.f32 %v2942_v44, %v1315_v42 }
 0x714   : > { %2004 = vst.msk [vmem:[%s2945_s25 + $0x10] sm:$0xff] %vm640_vm2, %v1316_v45  ;;  %v1319_v46 = vsel %vm640_vm2, %v1316_v45, -inf }
 0x715   : > { %1320 = vmax.xlane.f32.xlu0 %v1319_v46 }
 0x72b   : > { %1330 = vrot.lane.b32.xlu0 %v2955_v53, %s2628_s13 }
 0x72f   : > { %1518 = vrot.lane.b32.xlu0 %v1516_v49, %s2627_s12 }
 0x79e   : > { %v1321_v50 = vpop.xlane.xlu0 %1320 }
 0x79f   : > { %v1322_v51 = vsub.f32 %v1316_v45, %v1321_v50 }
 0x7a1   : > { %v1323_v52 = vmul.f32 1.442695, %v1322_v51 }
 0x7a2   : > { %v1331_v54 = vpop.permute.xlu0 %1330 }
 0x7a3   : > { %2289 = vpow2.f32 %v1323_v52  ;;  %v1333_v55 = vsel %vm640_vm2, %v1331_v54, %v2966_v1 }
 0x7a4   : > { %2120 = vmatpush3.msra.mxu1 %v1333_v55 }
 0x7a5   : > { %2135 = vmatprep.subr.mxu1 %v2622_v0 }
 0x7a6   : > { %v1519_v61 = vpop.permute.xlu0 %1518 }
 0x7a7   : > { %v1521_v63 = vsel %vm640_vm2, %v2999_v29, %v1519_v61 }
 0x7b0   : > { %v2290_v56 = vpop.eup %2289 }
 0x7b1   : > { %v1325_v57 = vsel %vm640_vm2, %v2290_v56, 0.0 }
 0x7b2   : > { %1326 = vadd.xlane.f32.xlu1 %v1325_v57 }
 0x7c3   : > { %1523 = vrot.lane.b32.xlu1 %v2999_v29, %s2625_s16 }
 0x83b   : > { %v1327_v53 = vpop.xlane.xlu1 %1326 }
 0x83c   : > { %2291 = vrcp.f32 %v1327_v53 }
 0x83f   : > { %v1524_v59 = vpop.permute.xlu1 %1523 }
 0x840   : > { %v1526_v62 = vsel %vm640_vm2, %v1524_v59, %v2925_v39 }
 0x849   : > { %v2292_v58 = vpop.eup %2291 }
 0x84a   : > { %v1329_v60 = vmul.f32 %v2292_v58, %v2290_v56 }
 0x84c   : > { %2122 = vmatmul.mubr.msk.f32.vlgmr.msra.gmra.mxu1 %vm640_vm2, %v1329_v60 }
 0x84d   : > { %2136 = vmatpush3.xpose.msk.msra.mxu1 %vm651_vm3, %v1526_v62  ;;  %2137 = vmatprep.mubr.msk.f32.mxu1 %vm2623_vm0, %v2622_v0 }
 0x84e   : > { %2140 = vmatprep.subr.mxu1 %v2622_v0 }
 0x850   : > { %2138 = vmatmul.mubr.msk.f32.vlgmr.msra.gmra.mxu1 %vm651_vm3, %v1521_v63 }
 0x851   : > { %2142 = vmatprep.mubr.msk.f32.mxu1 %vm2623_vm0, %v2622_v0 }
 0x90c   : > { %v1403_v2 = vpop.f32.mrf.mxu1 }
 0x90e   : > { %v2123_v3 = vpop.f32.mrf.mxu1 }
 0x910   : > { %v1599_v39 = vpop.f32.mrf.mxu1 }
 0x911   : > { %v1603_v4 = vmul.f32 0.35355338, %v1599_v39 }
 0x912   : > { %v2139_v5 = vpop.f32.mrf.mxu1 }
 0x913   : > { %v1604_v7 = vadd.f32 %v2942_v44, %v1603_v4 }
 0x915   : > { %2015 = vst.msk [vmem:[%s2945_s25 + $0x18] sm:$0xff] %vm640_vm2, %v1604_v7  ;;  %v1607_v8 = vsel %vm640_vm2, %v1604_v7, -inf }
 0x916   : > { %1608 = vmax.xlane.f32.xlu0 %v1607_v8 }
 0x92c   : > { %1618 = vrot.lane.b32.xlu0 %v2999_v29, %s2628_s13 }
 0x930   : > { %839 = vrot.lane.b32.xlu0 %v2885_v6, %s2629_s1 }
 0x99f   : > { %v1609_v0 = vpop.xlane.xlu0 %1608 }
 0x9a0   : > { %v1610_v9 = vsub.f32 %v1604_v7, %v1609_v0 }
 0x9a2   : > { %v1611_v11 = vmul.f32 1.442695, %v1610_v9 }
 0x9a3   : > { %v1619_v12 = vpop.permute.xlu0 %1618 }
 0x9a4   : > { %2293 = vpow2.f32 %v1611_v11  ;;  %v1621_v44 = vsel %vm640_vm2, %v1619_v12, %v2966_v1 }
 0x9a5   : > { %2141 = vmatpush3.msra.mxu1 %v1621_v44 }
 0x9a7   : > { %v840_v18 = vpop.permute.xlu0 %839 }
 0x9a8   : > { %v1125_v1 = vmul.f32 %v3018_v30, %v840_v18  ;;  %v1413_v19 = vmul.f32 %v1403_v2, %v840_v18  ;;  %v842_v34 = vmul.f32 %v840_v18, %v2983_v10 }
 0x9b1   : > { %v2294_v13 = vpop.eup %2293 }
 0x9b2   : > { %v1613_v14 = vsel %vm640_vm2, %v2294_v13, 0.0 }
 0x9b3   : > { %1614 = vadd.xlane.f32.xlu1 %v1613_v14 }
 0x9c4   : > { %830 = vrot.lane.b32.xlu1 %v2920_v32, %s2627_s12 }
 0xa3c   : > { %v1615_v15 = vpop.xlane.xlu1 %1614 }
 0xa3d   : > { %2295 = vrcp.f32 %v1615_v15 }
 0xa40   : > { %v831_v16 = vpop.permute.xlu1 %830 }
 0xa41   : > { %v1407_v6 = vmul.f32 %v1403_v2, %v831_v16  ;;  %v1119_v17 = vmul.f32 %v3018_v30, %v831_v16  ;;  %v833_v22 = vmul.f32 %v831_v16, %v2983_v10 }
 0xa43   : > { %1409 = vrot.lane.b32.xlu0 %v1407_v6, %s2625_s16  ;;  %1121 = vrot.lane.b32.xlu1 %v1119_v17, %s2625_s16 }
 0xa47   : > { %1127 = vrot.lane.b32.xlu1 %v1125_v1, %s2628_s13 }
 0xa4a   : > { %v2296_v20 = vpop.eup %2295 }
 0xa4b   : > { %1415 = vrot.lane.b32.xlu1 %v1413_v19, %s2628_s13  ;;  %v1617_v32 = vmul.f32 %v2296_v20, %v2294_v13 }
 0xa4d   : > { %2143 = vmatmul.mubr.msk.f32.vlgmr.msra.gmra.mxu1 %vm640_vm2, %v1617_v32 }
 0xa4f   : > { %835 = vrot.lane.b32.xlu1 %v833_v22, %s2625_s16 }
 0xab5   : > { %v1122_v23 = vpop.permute.xlu1 %1121  ;;  %v1410_v33 = vpop.permute.xlu0 %1409 }
 0xab6   : > { %v1124_v24 = vadd.f32 %v1122_v23, %v3018_v30  ;;  %v1412_v36 = vadd.f32 %v1410_v33, %v1403_v2 }
 0xab9   : > { %v1128_v25 = vpop.permute.xlu1 %1127 }
 0xaba   : > { %v1130_v26 = vsub.f32 %v1124_v24, %v1128_v25 }
 0xabc   : > { %1132 = vrot.lane.b32.xlu1 %v1130_v26, %s2627_s12 }
 0xabd   : > { %v1416_v35 = vpop.permute.xlu1 %1415 }
 0xabe   : > { %v1418_v37 = vsub.f32 %v1412_v36, %v1416_v35 }
 0xb0d   : > { %v1691_v27 = vpop.f32.mrf.mxu1 }
 0xb0e   : > { %v1695_v28 = vmul.f32 %v1691_v27, %v831_v16  ;;  %v1701_v31 = vmul.f32 %v1691_v27, %v840_v18 }
 0xb0f   : > { %v2144_v29 = vpop.f32.mrf.mxu1 }
 0xb10   : > { %1697 = vrot.lane.b32.xlu0 %v1695_v28, %s2625_s16  ;;  %s2487_s16 = sshll.u32 %s2630_s27, 4  ;;  %s2488_s16 = int_to_ptr.vmem [resolvable:$false] %s2487_s16 }
 0xb11   : > { %s2489_s29 = scalar_lea.vmem %s2488_s16, 1024  ;;  %p2490_p10 = scmp.lt.s32.totalorder %s3077_s7, %s2488_s16 }
 0xb12   : > { %p2491_p12 = scmp.lt.s32.totalorder %s2489_s29, %s2483_s22 }
 0xb14   : > { %1703 = vrot.lane.b32.xlu0 %v1701_v31, %s2628_s13  ;;  %p2492_p3 = por %p2491_p12, %p2490_p10 }
 0xb16   : > { %p2493_p5 = pnand %p2492_p3, %p2486_p11 }
 0xb18   : > { %844 = vrot.lane.b32.xlu0 %v842_v34, %s2628_s13 }
 0xb1c   : > { %1420 = vrot.lane.b32.xlu0 %v1418_v37, %s2629_s1 }
 0xb1d   : > { %2496 = shalt.err (!%p2493_p5)
}
 0xb1e   : > { %s2497_s30 = scalar_lea.hbm %s3083_s9, 512  ;;  %s2501_s14 = scalar_lea.hbm %s3171_s11, 1024 }
 0xb1f   : > { %p2498_p7 = scmp.ne.s32.totalorder %s3083_s9, %s2497_s30  ;;  %p2502_p4 = scmp.lt.s32.totalorder %s3083_s9, %s3171_s11 }
 0xb20   : > { %p2503_p8 = scmp.lt.s32.totalorder %s2501_s14, %s2497_s30 }
 0xb21   : > { %p2499_p13 = pnand %p2498_p7, %p2806_p2 }
 0xb22   : > { %p2504_p6 = por %p2503_p8, %p2502_p4 }
 0xb23   : > { %p2500_p0 = pneg %p2499_p13 }
 0xb25   : > { %p2505_p9 = pnand %p2504_p6, %p2500_p0 }
 0xb27   : > { %2508 = shalt.err (!%p2505_p9)
}
 0xb28   : > { %s2631_s24 = smov 128   ;;  %v836_v30 = vpop.permute.xlu1 %835  ;;  %vm1135_vm4 = vcmask 130112   ;;  %vm1423_vm5 = vcmask 195712   ;;  %s521_s15 = scalar_lea.vmem [#allocation14], %s1970_s2  ;;  %vm1711_vm6 = vcmask 261312  }
 0xb29   : > { %2170 = dma.vmem_to_hbm [thread:$0]  (%p2806_p2), %s3077_s7, 512, %s3083_s9, %s1719_s4, %s2631_s24, %s2631_s24, %s2627_s12   ;;  %v838_v42 = vadd.f32 %v836_v30, %v2983_v10 }
 0xb2a   : > { %s2019_s12 = sshll.u32 %s2601_s18, 7  ;;  %s1733_s7 = sshll.u32 %s521_s15, 4  ;;  %s1734_s7 = int_to_ptr.vmem [resolvable:$true] %s1733_s7 }
 0xb2b   : > { %s1714_s4 = scalar_lea.sflag [#allocation4], %s2849_s0  ;;  %s2509_s22 = scalar_lea.vmem %s1734_s7, 128 }
 0xb2c   : > { %p2510_p11 = scmp.ne.s32.totalorder %s1734_s7, %s2509_s22  ;;  %s2632_s2 = smov [#allocation14]  }
 0xb2d   : > { %s2513_s27 = sshll.u32 %s2632_s2, 4  ;;  %s2514_s27 = int_to_ptr.vmem [resolvable:$false] %s2513_s27 }
 0xb2e   : > { %v1133_v46 = vpop.permute.xlu1 %1132  ;;  %p2511_p10 = pnand %p2510_p11, %p2806_p2  ;;  %s2515_s18 = scalar_lea.vmem %s2514_s27, 256 }
 0xb2f   : > { %p2516_p3 = scmp.lt.s32.totalorder %s1734_s7, %s2514_s27  ;;  %p2517_p5 = scmp.lt.s32.totalorder %s2515_s18, %s2509_s22 }
 0xb30   : > { %p2512_p12 = pneg %p2511_p10 }
 0xb31   : > { %p2518_p7 = por %p2517_p5, %p2516_p3 }
 0xb33   : > { %p2519_p13 = pnand %p2518_p7, %p2512_p12 }
 0xb82   : > { %v1698_v38 = vpop.permute.xlu0 %1697 }
 0xb83   : > { %v1700_v21 = vadd.f32 %v1698_v38, %v1691_v27 }
 0xb86   : > { %v1704_v40 = vpop.permute.xlu0 %1703 }
 0xb87   : > { %v1706_v41 = vsub.f32 %v1700_v21, %v1704_v40 }
 0xb89   : > { %1708 = vrot.lane.b32.xlu1 %v1706_v41, %s2624_s21  ;;  %s3118_s21 = scalar_lea.hbm %s3170_s10, %s2019_s12 }
 0xb8a   : > { %v845_v43 = vpop.permute.xlu0 %844 }
 0xb8b   : > { %v847_v45 = vsub.f32 %v838_v42, %v845_v43 }
 0xb8d   : > { %848 = vst.msk [vmem:[%s521_s15] sm:$0xff] %vm640_vm2, %v847_v45 }
 0xb8e   : > { %1136 = vst.msk [vmem:[%s521_s15] sm:$0xff] %vm1135_vm4, %v1133_v46  ;;  %v1421_v47 = vpop.permute.xlu0 %1420 }
 0xb8f   : > { %1424 = vst.msk [vmem:[%s521_s15] sm:$0xff] %vm1423_vm5, %v1421_v47 }
 0xbfb   : > { %v1709_v10 = vpop.permute.xlu1 %1708 }
 0xbfc   : > { %1712 = vst.msk [vmem:[%s521_s15] sm:$0xff] %vm1711_vm6, %v1709_v10 }
 0xbfd   : > { %2522 = shalt.err (!%p2519_p13)
}
 0xbfe   : > { %s2523_s16 = scalar_lea.hbm %s3118_s21, 128  ;;  %s2527_s30 = scalar_lea.hbm %s3170_s10, 256 }
 0xbff   : > { %p2524_p0 = scmp.ne.s32.totalorder %s3118_s21, %s2523_s16  ;;  %p2528_p6 = scmp.lt.s32.totalorder %s3118_s21, %s3170_s10 }
 0xc00   : > { %p2529_p9 = scmp.lt.s32.totalorder %s2527_s30, %s2523_s16 }
 0xc01   : > { %p2525_p4 = pnand %p2524_p0, %p2806_p2 }
 0xc02   : > { %p2530_p11 = por %p2529_p9, %p2528_p6 }
 0xc03   : > { %p2526_p8 = pneg %p2525_p4 }
 0xc05   : > { %p2531_p10 = pnand %p2530_p11, %p2526_p8 }
 0xc07   : > { %2534 = shalt.err (!%p2531_p10)
}
 0xc08   : > { %2169 = dma.vmem_to_hbm [thread:$0]  (%p2806_p2), %s1734_s7, 128, %s3118_s21, %s1714_s4  }
 0xc09 PF: > { %s1763_s14 = sand.u32 1, %s2589_s8   ;;  %p3207_p12 = scmp.ge.s32.totalorder %s2609_s20, 2 }
 0xc0a   : > { %s1764_s23 = scalar_lea.sflag [#allocation4], %s1763_s14 }
 0xc0b   : > { %p2197_p3 = pnand %p3207_p12, %p2814_p1 }
 0xc0d   : > { %p2198_p5 = pneg %p2197_p3 }
 0xc0f   : > { %2580 = dma.done.wait (%p2198_p5), %s1764_s23, 128  }
 0xc10   : > { %2582 = vsyncadd (%p2198_p5), %s1764_s23, 4294967168  ;;  %s1773_s1 = scalar_lea.sflag [#allocation16], %s1763_s14 }
 0xc11   : > { %2584 = dma.done.wait (%p2198_p5), %s1773_s1, 512  }
 0xc12   : > { %2586 = vsyncadd (%p2198_p5), %s1773_s1, 4294966784  ;;  %s36_s20 = sadd.s32 1, %s2609_s20   ;;  %s3208_s26 = sld [smem:[#allocation24_spill]] }
 0xc13   : > { %p33_p7 = scmp.ge.s32.totalorder %s36_s20, 4   ;;  %s3209_s9 = sld [smem:[#allocation26_spill]] }
 0xc14   : > { %s3210_s24 = sld [smem:[#allocation25_spill]]  ;;  %s3211_s8 = smov %s2593_s17 }
 0xc15   : > { %s3213_s18 = smov %s2605_s19 }
 0xc16   :  { %35 = sbr.rel (!%p33_p7) target bundleno = 19 (0x13), region = 166 }
 0xc18   : > { %s3212_s17 = smov %s3208_s26 }
 0xc1a   : > { %s3214_s19 = smov %s3210_s24 }
 0xc1b   :  { %1778 = vsyncpa [#allocation3], 1 }
 0xc1c   :  { %1780 = vsyncpa [#allocation3 + $0x1], 1 }
 0xc1d   :  { %1781 = vsyncpa [#allocation6], 1 }
 0xc1e   :  { %1782 = vsyncpa [#allocation9], 1 }
 0xc1f   :  { %1784 = vsyncpa [#allocation9 + $0x1], 1 }
 0xc20   :  { %1785 = vsyncpa [#allocation12], 1 }
 0xc21   :  { %1786 = vsyncpa [#allocation4], 1 }
 0xc22   :  { %1788 = vsyncpa [#allocation4 + $0x1], 1 }
 0xc23   :  { %1789 = vsyncpa [#allocation16], 1 }
 0xc24   :  { %1791 = vsyncpa [#allocation16 + $0x1], 1 }

</bundles_post_ra>
